<compile_context>
chip_gen: v5e
topology: v5e:2x2
jax: 0.10.0
libtpu: 0.0.40
codegen_flags: <defaults>
</compile_context>

<pallas_src>
import functools

import jax
import jax.numpy as jnp
from jax.experimental import pallas as pl
from jax.experimental.pallas import tpu as pltpu


_VMEM = pl.BlockSpec(memory_space=pltpu.MemorySpace.VMEM)


# ------------------------------ fused kernel ------------------------------- #

def _fused_kernel(p1_ref, w1_ref, w2_ref, b2_ref, wfeat_ref, bfeat_ref,
                  eps_ref, whead_ref, bhead_ref, fcw_ref, fcb_ref,
                  f2w_ref, f2b_ref, out_ref, s1_ref, *, batch, h2, ph):
    """Whole GenConViTVAE forward; all intermediates stay in VMEM / registers.

    Layouts (everything 2-D, channels on the lane dim):
      p1_ref : parity-folded conv1 patches.  Row (hq, wq, b); lanes = 4 parity
               blocks x (3x3xCin patch + validity indicator), zero padded to 128.
      s1_ref : conv1 output in the same parity-in-lane layout:
               s1[(hq, wq, b), par*16 + c] = padded_conv1[b, 2*hq+par_h, 2*wq+par_w, c]
               (exactly 0 on the conv2 zero-padding halo).
      w2_ref : 4 stacked (64, C2) groups, one per (dh, dw) tap offset.
    """
    B = batch
    CP = w1_ref.shape[1]           # 64 = 4 parities x 16 merged conv1 channels
    C2 = w2_ref.shape[1]           # 32 merged conv2 channels (16 VAE | 16 backbone)
    lat = eps_ref.shape[1]

    # ---- conv1 (both branches, 4 output parities folded into lanes) -------- #
    # Bias comes via indicator columns; invalid (halo) positions are exact 0.
    s1_ref[...] = jnp.maximum(
        jnp.dot(p1_ref[...], w1_ref[...], preferred_element_type=jnp.float32),
        0.0)                                                   # (ph*ph*B, CP)

    # ---- conv2 as 4 shifted matmuls (one per (dh, dw) tap group) ------------ #
    # Every operand slice is contiguous & sublane aligned: no scatter, no
    # im2col scratch, no masked lane-offset stores.
    y2 = None
    for g, (dh, dw) in enumerate(((0, 0), (0, 1), (1, 0), (1, 1))):
        rows = [s1_ref[((oh + dh) * ph + dw) * B:((oh + dh) * ph + dw + h2) * B, :]
                for oh in range(h2)]
        xg = jnp.concatenate(rows, axis=0)                     # (h2*h2*B, CP)
        part = jnp.dot(xg, w2_ref[g * CP:(g + 1) * CP, :],
                       preferred_element_type=jnp.float32)
        y2 = part if y2 is None else y2 + part
    y2 = jnp.maximum(y2 + b2_ref[...], 0.0)                    # rows (oh2, ow2, b)

    # ---- [mu | logvar | GAP]: direct contraction, no flatten scratch -------- #
    feats = None
    for p in range(h2 * h2):
        contrib = jnp.dot(y2[p * B:(p + 1) * B, :],
                          wfeat_ref[p * C2:(p + 1) * C2, :],
                          preferred_element_type=jnp.float32)
        feats = contrib if feats is None else feats + contrib
    feats = feats + bfeat_ref[...]                             # (B, 2*lat + 16)

    mu = feats[:, :lat]
    logvar = feats[:, lat:2 * lat]
    pooled = feats[:, 2 * lat:]

    # VAE reparameterization (epilogue kept in f32: v5e has no bf16 VPU/EUP).
    z = mu + jnp.exp(0.5 * logvar) * eps_ref[...]

    # ---- backbone head + classifier: fc2(relu(fc(relu(cat(x1, z))))) -------- #
    x1 = jnp.dot(pooled, whead_ref[...],
                 preferred_element_type=jnp.float32) + bhead_ref[...]
    cat = jnp.concatenate([jnp.maximum(x1, 0.0), jnp.maximum(z, 0.0)], axis=1)
    h = jnp.maximum(
        jnp.dot(cat, fcw_ref[...], preferred_element_type=jnp.float32)
        + fcb_ref[...], 0.0)
    out_ref[...] = jnp.dot(h, f2w_ref[...],
                           preferred_element_type=jnp.float32) + f2b_ref[...]


# ----------------------------- parameter packing ---------------------------- #

def init_params(key, img_size=16, in_ch=3, latent_dim=32, backbone_dim=32,
                num_classes=2):
    """Deterministic synthetic parameters (shapes mirror the module's roles)."""
    ks = jax.random.split(key, 12)

    def lin(k, fan_in, fan_out):
        return (jax.random.normal(k, (fan_in, fan_out), jnp.float32)
                / jnp.sqrt(jnp.float32(fan_in)))

    s4 = img_size // 4  # spatial extent after two stride-2 convs
    p = {}
    # --- VAE encoder ---
    p["ve_c1_w"] = lin(ks[0], 3 * 3 * in_ch, 8)
    p["ve_c1_b"] = jnp.zeros((1, 8), jnp.float32)
    p["ve_c2_w"] = lin(ks[1], 3 * 3 * 8, 16)
    p["ve_c2_b"] = jnp.zeros((1, 16), jnp.float32)
    p["ve_mu_w"] = lin(ks[2], 16 * s4 * s4, latent_dim)   # NHWC-flatten convention
    p["ve_mu_b"] = jnp.zeros((1, latent_dim), jnp.float32)
    p["ve_lv_w"] = lin(ks[3], 16 * s4 * s4, latent_dim)
    p["ve_lv_b"] = jnp.zeros((1, latent_dim), jnp.float32)
    # --- backbone stand-in (role of swinv2+convnext hybrid, head -> backbone_dim) ---
    p["bb_c1_w"] = lin(ks[4], 3 * 3 * in_ch, 8)
    p["bb_c1_b"] = jnp.zeros((1, 8), jnp.float32)
    p["bb_c2_w"] = lin(ks[5], 3 * 3 * 8, 16)
    p["bb_c2_b"] = jnp.zeros((1, 16), jnp.float32)
    p["bb_head_w"] = lin(ks[6], 16, backbone_dim)
    p["bb_head_b"] = jnp.zeros((1, backbone_dim), jnp.float32)
    # --- classifier head: num_feature = backbone_dim + latent_dim, fc -> //4 ---
    num_feature = backbone_dim + latent_dim
    hid = num_feature // 4
    p["fc_w_a"] = lin(ks[7], backbone_dim, hid)   # rows acting on x1
    p["fc_w_b"] = lin(ks[8], latent_dim, hid)     # rows acting on z
    p["fc_b"] = jnp.zeros((1, hid), jnp.float32)
    p["fc2_w"] = lin(ks[9], hid, num_classes)
    p["fc2_b"] = jnp.zeros((1, num_classes), jnp.float32)
    return p


def pack_params(p):
    """One-time weight merging/packing so the kernel is matmul + slices only."""
    c1v, c1b = p["ve_c1_w"].shape[1], p["bb_c1_w"].shape[1]
    cm1 = c1v + c1b                                  # 16 merged conv1 channels
    c2v, c2b = p["ve_c2_w"].shape[1], p["bb_c2_w"].shape[1]
    C2 = c2v + c2b                                   # 32 merged conv2 channels
    kin = p["ve_c1_w"].shape[0]                      # 9 * in_ch
    lat = p["ve_mu_w"].shape[1]
    npos = p["ve_mu_w"].shape[0] // c2v              # spatial positions after conv2

    kblk = kin + 1                                   # per-parity patch cols (+1 indicator)
    kpad = -(-(4 * kblk) // 128) * 128               # pad K to a full lane tile

    # conv1: per-parity block [VAE | backbone] weights; bias via indicator row.
    w1b = jnp.concatenate([p["ve_c1_w"], p["bb_c1_w"]], axis=1)        # (kin, 16)
    b1b = jnp.concatenate([p["ve_c1_b"], p["bb_c1_b"]], axis=1)        # (1, 16)
    blk = jnp.concatenate([w1b, b1b], axis=0)                          # (kblk, 16)
    w1 = jnp.zeros((kpad, 4 * cm1), jnp.float32)
    for j in range(4):
        w1 = w1.at[j * kblk:(j + 1) * kblk, j * cm1:(j + 1) * cm1].set(blk)

    # conv2: 4 stacked (4*cm1, C2) groups, one per (dh, dw) tap offset, with
    # tap (ki, kj) placed in parity block (ki%2, kj%2) of group (ki//2, kj//2).
    ve2 = p["ve_c2_w"].reshape(9, c1v, c2v)
    bb2 = p["bb_c2_w"].reshape(9, c1b, c2b)
    w2 = jnp.zeros((4, 4 * cm1, C2), jnp.float32)
    for ki in range(3):
        for kj in range(3):
            dh, hp = ki // 2, ki % 2
            dw, ws = kj // 2, kj % 2
            g, par, t = dh * 2 + dw, hp * 2 + ws, ki * 3 + kj
            w2 = w2.at[g, par * cm1:par * cm1 + c1v, :c2v].set(ve2[t])
            w2 = w2.at[g, par * cm1 + c1v:(par + 1) * cm1, c2v:].set(bb2[t])
    w2 = w2.reshape(4 * 4 * cm1, C2)
    b2 = jnp.concatenate([p["ve_c2_b"], p["bb_c2_b"]], axis=1)

    # merged feature reduction: [mu | logvar | GAP] over the conv2 output.
    wlat = jnp.concatenate([p["ve_mu_w"], p["ve_lv_w"]], axis=1)
    wlat = wlat.reshape(npos, c2v, 2 * lat)
    wfeat = jnp.zeros((npos, C2, 2 * lat + c2b), jnp.float32)
    wfeat = wfeat.at[:, :c2v, :2 * lat].set(wlat)
    gap = jnp.eye(c2b, dtype=jnp.float32) / float(npos)
    wfeat = wfeat.at[:, c2v:, 2 * lat:].set(jnp.broadcast_to(gap, (npos, c2b, c2b)))
    wfeat = wfeat.reshape(npos * C2, 2 * lat + c2b)
    bfeat = jnp.concatenate([p["ve_mu_b"], p["ve_lv_b"],
                             jnp.zeros((1, c2b), jnp.float32)], axis=1)

    # classifier fc: one merged (backbone_dim + lat, hid) weight (review item 5).
    fc_w = jnp.concatenate([p["fc_w_a"], p["fc_w_b"]], axis=0)

    return dict(w1=w1, w2=w2, b2=b2, wfeat=wfeat, bfeat=bfeat,
                bb_head_w=p["bb_head_w"], bb_head_b=p["bb_head_b"],
                fc_w=fc_w, fc_b=p["fc_b"],
                fc2_w=p["fc2_w"], fc2_b=p["fc2_b"])


# ------------------------------ forward wrapper ----------------------------- #

def genconvit_vae_forward(packed, x_nchw, eps):
    # layout: x_nchw is (B, C, H, W) (PyTorch); convert to NHWC.
    x = jnp.transpose(x_nchw, (0, 2, 3, 1)).astype(jnp.float32)
    B, H, W, Cin = x.shape
    # the stem packing is specialized to 3x3 / stride-2 / pad-1 convs, square even images
    assert H == W and H % 4 == 0, "specialized to 3x3/stride-2/pad-1 stems, H % 4 == 0"
    h1, h2 = H // 2, H // 4
    ph = h2 + 1                     # parity-folded (padded) conv1 output extent
    lat = eps.shape[1]
    n_cls = packed["fc2_w"].shape[1]
    CP = packed["w1"].shape[1]      # 4 * merged conv1 channels
    C2 = packed["w2"].shape[1]
    kpad = packed["w1"].shape[0]

    # -- parity-folded conv1 im2col, built wrapper-side (one fused XLA op on a
    #    tiny image).  Row (hq, wq, b); per parity block (hp, ws): the 3x3xCin
    #    window of conv1 output position (2*hq+hp-1, 2*wq+ws-1) plus a validity
    #    indicator column (0 on the conv2 halo -> exact zeros after conv1).
    xpad = jnp.pad(x, ((0, 0), (3, 3), (3, 3), (0, 0)))
    qs = jnp.arange(ph)
    blocks = []
    for hp in range(2):
        for ws in range(2):
            cols = [xpad[:, 2 * hp + ki: 2 * hp + ki + 4 * (ph - 1) + 1: 4,
                            2 * ws + kj: 2 * ws + kj + 4 * (ph - 1) + 1: 4, :]
                    for ki in range(3) for kj in range(3)]
            blk = jnp.concatenate(cols, axis=-1)                  # (B, ph, ph, 9*Cin)
            vh = ((2 * qs + hp - 1) >= 0) & ((2 * qs + hp - 1) < h1)
            vw = ((2 * qs + ws - 1) >= 0) & ((2 * qs + ws - 1) < h1)
            v = (vh[:, None] & vw[None, :]).astype(jnp.float32)    # (ph, ph)
            blk = blk * v[None, :, :, None]
            ind = jnp.broadcast_to(v[None, :, :, None], (B, ph, ph, 1))
            blocks.append(jnp.concatenate([blk, ind], axis=-1))    # (B, ph, ph, 9*Cin+1)
    patches = jnp.concatenate(blocks, axis=-1)                     # (B, ph, ph, 4*(9*Cin+1))
    p1 = jnp.transpose(patches, (1, 2, 0, 3)).reshape(ph * ph * B, patches.shape[-1])
    p1 = jnp.pad(p1, ((0, 0), (0, kpad - p1.shape[1])))            # K -> full lane tile

    kernel = functools.partial(_fused_kernel, batch=B, h2=h2, ph=ph)

    args = (p1, packed["w1"], packed["w2"], packed["b2"], packed["wfeat"],
            packed["bfeat"], eps, packed["bb_head_w"], packed["bb_head_b"],
            packed["fc_w"], packed["fc_b"], packed["fc2_w"], packed["fc2_b"])

    fdim = packed["wfeat"].shape[1]
    flops = 2 * (ph * ph * B * kpad * CP
                 + 4 * (h2 * h2 * B) * CP * C2
                 + (h2 * h2) * B * C2 * fdim
                 + B * packed["bb_head_w"].shape[0] * packed["bb_head_w"].shape[1]
                 + B * packed["fc_w"].shape[0] * packed["fc_w"].shape[1]
                 + B * packed["fc2_w"].shape[0] * n_cls)
    bytes_accessed = sum(int(a.size) * 4 for a in args) + B * n_cls * 4

    return pl.pallas_call(
        kernel,
        out_shape=jax.ShapeDtypeStruct((B, n_cls), jnp.float32),
        in_specs=[_VMEM] * len(args),
        out_specs=_VMEM,
        scratch_shapes=[
            pltpu.VMEM((ph * ph * B, CP), jnp.float32),   # parity-folded conv1 output
        ],
        cost_estimate=pl.CostEstimate(flops=flops,
                                      transcendentals=B * lat,
                                      bytes_accessed=bytes_accessed),
    )(*args)


# ----------------------------- plain-JAX reference -------------------------- #

def _reference_forward(params, x_nchw, eps):
    """Straightforward JAX implementation of the same module (for validation)."""
    x = jnp.transpose(x_nchw, (0, 2, 3, 1)).astype(jnp.float32)
    B = x.shape[0]

    def conv(xin, w, b):
        Bq, H, _, C = xin.shape
        xp = jnp.pad(xin, ((0, 0), (1, 1), (1, 1), (0, 0)))
        Ho = H // 2
        cols = [xp[:, i:i + 2 * Ho:2, j:j + 2 * Ho:2, :]
                for i in range(3) for j in range(3)]
        pat = jnp.concatenate(cols, axis=-1).reshape(Bq * Ho * Ho, 9 * C)
        y = jnp.maximum(pat @ w + b, 0.0)
        return y.reshape(Bq, Ho, Ho, -1)

    h = conv(x, params["ve_c1_w"], params["ve_c1_b"])
    h = conv(h, params["ve_c2_w"], params["ve_c2_b"])
    hf = h.reshape(B, -1)
    mu = hf @ params["ve_mu_w"] + params["ve_mu_b"]
    lv = hf @ params["ve_lv_w"] + params["ve_lv_b"]
    z = mu + jnp.exp(0.5 * lv) * eps

    g = conv(x, params["bb_c1_w"], params["bb_c1_b"])
    g = conv(g, params["bb_c2_w"], params["bb_c2_b"])
    pooled = g.mean(axis=(1, 2))
    x1 = pooled @ params["bb_head_w"] + params["bb_head_b"]

    a = jnp.maximum(x1, 0.0)
    bz = jnp.maximum(z, 0.0)
    hh = jnp.maximum(a @ params["fc_w_a"] + bz @ params["fc_w_b"] + params["fc_b"], 0.0)
    return hh @ params["fc2_w"] + params["fc2_b"]


# ----------------------------------- main ----------------------------------- #

if __name__ == "__main__":
    key = jax.random.PRNGKey(0)
    kp, kx, ke = jax.random.split(key, 3)

    # B=8 fills the 8 sublanes of every (B, ...) matrix and makes all in-kernel
    # slice starts multiples of 8 rows (review item 7 / alignment).
    B, C, H, W = 8, 3, 16, 16
    latent_dim, backbone_dim, num_classes = 32, 32, 2

    x = jax.random.normal(kx, (B, C, H, W), jnp.float32)
    # deterministic reparameterization noise (replaces torch.randn in the VAE)
    eps = jax.random.normal(ke, (B, latent_dim), jnp.float32)

    params = init_params(kp, img_size=H, in_ch=C, latent_dim=latent_dim,
                         backbone_dim=backbone_dim, num_classes=num_classes)
    packed = pack_params(params)   # one-time weight merging / packing

    fwd = jax.jit(genconvit_vae_forward)
    out = jax.block_until_ready(fwd(packed, x, eps))

    ref = jax.block_until_ready(_reference_forward(params, x, eps))

    assert out.shape == (B, num_classes), out.shape
    assert bool(jnp.all(jnp.isfinite(out)))
    err = jnp.max(jnp.abs(out - ref))
    assert bool(err < 1e-3 * (1.0 + jnp.max(jnp.abs(ref)))), (out, ref, err)
    print("KERNEL_OK")
</pallas_src>

<mosaic_0001>
module attributes {stable_mosaic.version = 11 : i64} {
  func.func @_fused_kernel(%arg0: memref<200x128xf32, #tpu.memory_space<vmem>>, %arg1: memref<128x64xf32, #tpu.memory_space<vmem>>, %arg2: memref<256x32xf32, #tpu.memory_space<vmem>>, %arg3: memref<1x32xf32, #tpu.memory_space<vmem>>, %arg4: memref<512x80xf32, #tpu.memory_space<vmem>>, %arg5: memref<1x80xf32, #tpu.memory_space<vmem>>, %arg6: memref<8x32xf32, #tpu.memory_space<vmem>>, %arg7: memref<16x32xf32, #tpu.memory_space<vmem>>, %arg8: memref<1x32xf32, #tpu.memory_space<vmem>>, %arg9: memref<64x16xf32, #tpu.memory_space<vmem>>, %arg10: memref<1x16xf32, #tpu.memory_space<vmem>>, %arg11: memref<16x2xf32, #tpu.memory_space<vmem>>, %arg12: memref<1x2xf32, #tpu.memory_space<vmem>>, %arg13: memref<8x2xf32, #tpu.memory_space<vmem>>, %arg14: memref<200x64xf32, #tpu.memory_space<vmem>>) attributes {dimension_semantics = [], scalar_prefetch = 0 : i64, scratch_operands = 1 : i64, tpu.core_type = #tpu.core_type<tc>} {
    %c0 = arith.constant 0 : index
    %c0_0 = arith.constant 0 : index
    %0 = vector.load %arg0[%c0, %c0_0] : memref<200x128xf32, #tpu.memory_space<vmem>>, vector<200x128xf32>
    %c0_1 = arith.constant 0 : index
    %c0_2 = arith.constant 0 : index
    %1 = vector.load %arg1[%c0_1, %c0_2] : memref<128x64xf32, #tpu.memory_space<vmem>>, vector<128x64xf32>
    %cst = arith.constant dense<0.000000e+00> : vector<200x64xf32>
    %2 = tpu.matmul %0, %1, %cst {dimension_numbers = #tpu.dot_dimension_numbers<[1], [0], [0], [1], [0, 0, 1, 1], [], []>} : vector<200x128xf32>, vector<128x64xf32>, vector<200x64xf32> -> vector<200x64xf32>
    %cst_3 = arith.constant 0.000000e+00 : f32
    %3 = vector.broadcast %cst_3 : f32 to vector<200x64xf32>
    %4 = arith.maximumf %2, %3 : vector<200x64xf32>
    %c0_4 = arith.constant 0 : index
    %c0_5 = arith.constant 0 : index
    %5 = vector.load %arg14[%c0_4, %c0_5] : memref<200x64xf32, #tpu.memory_space<vmem>>, vector<200x64xf32>
    tpu.vector_store %arg14[%c0_4, %c0_5], %4 {strides = array<i32>} : memref<200x64xf32, #tpu.memory_space<vmem>>, vector<200x64xf32>,
    %c0_6 = arith.constant 0 : index
    %c0_7 = arith.constant 0 : index
    %6 = vector.load %arg14[%c0_6, %c0_7] : memref<200x64xf32, #tpu.memory_space<vmem>>, vector<32x64xf32>
    %c40 = arith.constant 40 : index
    %c0_8 = arith.constant 0 : index
    %7 = vector.load %arg14[%c40, %c0_8] : memref<200x64xf32, #tpu.memory_space<vmem>>, vector<32x64xf32>
    %c80 = arith.constant 80 : index
    %c0_9 = arith.constant 0 : index
    %8 = vector.load %arg14[%c80, %c0_9] : memref<200x64xf32, #tpu.memory_space<vmem>>, vector<32x64xf32>
    %c120 = arith.constant 120 : index
    %c0_10 = arith.constant 0 : index
    %9 = vector.load %arg14[%c120, %c0_10] : memref<200x64xf32, #tpu.memory_space<vmem>>, vector<32x64xf32>
    %10 = tpu.concatenate %6, %7, %8, %9 in 0 : vector<32x64xf32>, vector<32x64xf32>, vector<32x64xf32>, vector<32x64xf32> -> vector<128x64xf32>
    %c0_11 = arith.constant 0 : index
    %c0_12 = arith.constant 0 : index
    %11 = vector.load %arg2[%c0_11, %c0_12] : memref<256x32xf32, #tpu.memory_space<vmem>>, vector<64x32xf32>
    %cst_13 = arith.constant dense<0.000000e+00> : vector<128x32xf32>
    %12 = tpu.matmul %10, %11, %cst_13 {dimension_numbers = #tpu.dot_dimension_numbers<[1], [0], [0], [1], [0, 0, 1, 1], [], []>} : vector<128x64xf32>, vector<64x32xf32>, vector<128x32xf32> -> vector<128x32xf32>
    %c8 = arith.constant 8 : index
    %c0_14 = arith.constant 0 : index
    %13 = vector.load %arg14[%c8, %c0_14] : memref<200x64xf32, #tpu.memory_space<vmem>>, vector<32x64xf32>
    %c48 = arith.constant 48 : index
    %c0_15 = arith.constant 0 : index
    %14 = vector.load %arg14[%c48, %c0_15] : memref<200x64xf32, #tpu.memory_space<vmem>>, vector<32x64xf32>
    %c88 = arith.constant 88 : index
    %c0_16 = arith.constant 0 : index
    %15 = vector.load %arg14[%c88, %c0_16] : memref<200x64xf32, #tpu.memory_space<vmem>>, vector<32x64xf32>
    %c128 = arith.constant 128 : index
    %c0_17 = arith.constant 0 : index
    %16 = vector.load %arg14[%c128, %c0_17] : memref<200x64xf32, #tpu.memory_space<vmem>>, vector<32x64xf32>
    %17 = tpu.concatenate %13, %14, %15, %16 in 0 : vector<32x64xf32>, vector<32x64xf32>, vector<32x64xf32>, vector<32x64xf32> -> vector<128x64xf32>
    %c64 = arith.constant 64 : index
    %c0_18 = arith.constant 0 : index
    %18 = vector.load %arg2[%c64, %c0_18] : memref<256x32xf32, #tpu.memory_space<vmem>>, vector<64x32xf32>
    %cst_19 = arith.constant dense<0.000000e+00> : vector<128x32xf32>
    %19 = tpu.matmul %17, %18, %cst_19 {dimension_numbers = #tpu.dot_dimension_numbers<[1], [0], [0], [1], [0, 0, 1, 1], [], []>} : vector<128x64xf32>, vector<64x32xf32>, vector<128x32xf32> -> vector<128x32xf32>
    %20 = arith.addf %12, %19 : vector<128x32xf32>
    %c40_20 = arith.constant 40 : index
    %c0_21 = arith.constant 0 : index
    %21 = vector.load %arg14[%c40_20, %c0_21] : memref<200x64xf32, #tpu.memory_space<vmem>>, vector<32x64xf32>
    %c80_22 = arith.constant 80 : index
    %c0_23 = arith.constant 0 : index
    %22 = vector.load %arg14[%c80_22, %c0_23] : memref<200x64xf32, #tpu.memory_space<vmem>>, vector<32x64xf32>
    %c120_24 = arith.constant 120 : index
    %c0_25 = arith.constant 0 : index
    %23 = vector.load %arg14[%c120_24, %c0_25] : memref<200x64xf32, #tpu.memory_space<vmem>>, vector<32x64xf32>
    %c160 = arith.constant 160 : index
    %c0_26 = arith.constant 0 : index
    %24 = vector.load %arg14[%c160, %c0_26] : memref<200x64xf32, #tpu.memory_space<vmem>>, vector<32x64xf32>
    %25 = tpu.concatenate %21, %22, %23, %24 in 0 : vector<32x64xf32>, vector<32x64xf32>, vector<32x64xf32>, vector<32x64xf32> -> vector<128x64xf32>
    %c128_27 = arith.constant 128 : index
    %c0_28 = arith.constant 0 : index
    %26 = vector.load %arg2[%c128_27, %c0_28] : memref<256x32xf32, #tpu.memory_space<vmem>>, vector<64x32xf32>
    %cst_29 = arith.constant dense<0.000000e+00> : vector<128x32xf32>
    %27 = tpu.matmul %25, %26, %cst_29 {dimension_numbers = #tpu.dot_dimension_numbers<[1], [0], [0], [1], [0, 0, 1, 1], [], []>} : vector<128x64xf32>, vector<64x32xf32>, vector<128x32xf32> -> vector<128x32xf32>
    %28 = arith.addf %20, %27 : vector<128x32xf32>
    %c48_30 = arith.constant 48 : index
    %c0_31 = arith.constant 0 : index
    %29 = vector.load %arg14[%c48_30, %c0_31] : memref<200x64xf32, #tpu.memory_space<vmem>>, vector<32x64xf32>
    %c88_32 = arith.constant 88 : index
    %c0_33 = arith.constant 0 : index
    %30 = vector.load %arg14[%c88_32, %c0_33] : memref<200x64xf32, #tpu.memory_space<vmem>>, vector<32x64xf32>
    %c128_34 = arith.constant 128 : index
    %c0_35 = arith.constant 0 : index
    %31 = vector.load %arg14[%c128_34, %c0_35] : memref<200x64xf32, #tpu.memory_space<vmem>>, vector<32x64xf32>
    %c168 = arith.constant 168 : index
    %c0_36 = arith.constant 0 : index
    %32 = vector.load %arg14[%c168, %c0_36] : memref<200x64xf32, #tpu.memory_space<vmem>>, vector<32x64xf32>
    %33 = tpu.concatenate %29, %30, %31, %32 in 0 : vector<32x64xf32>, vector<32x64xf32>, vector<32x64xf32>, vector<32x64xf32> -> vector<128x64xf32>
    %c192 = arith.constant 192 : index
    %c0_37 = arith.constant 0 : index
    %34 = vector.load %arg2[%c192, %c0_37] : memref<256x32xf32, #tpu.memory_space<vmem>>, vector<64x32xf32>
    %cst_38 = arith.constant dense<0.000000e+00> : vector<128x32xf32>
    %35 = tpu.matmul %33, %34, %cst_38 {dimension_numbers = #tpu.dot_dimension_numbers<[1], [0], [0], [1], [0, 0, 1, 1], [], []>} : vector<128x64xf32>, vector<64x32xf32>, vector<128x32xf32> -> vector<128x32xf32>
    %36 = arith.addf %28, %35 : vector<128x32xf32>
    %c0_39 = arith.constant 0 : index
    %c0_40 = arith.constant 0 : index
    %37 = vector.load %arg3[%c0_39, %c0_40] : memref<1x32xf32, #tpu.memory_space<vmem>>, vector<1x32xf32>
    %38 = vector.broadcast %37 : vector<1x32xf32> to vector<128x32xf32>
    %39 = arith.addf %36, %38 : vector<128x32xf32>
    %cst_41 = arith.constant 0.000000e+00 : f32
    %40 = vector.broadcast %cst_41 : f32 to vector<128x32xf32>
    %41 = arith.maximumf %39, %40 : vector<128x32xf32>
    %42 = vector.extract_strided_slice %41 {offsets = [0, 0], sizes = [8, 32], strides = [1, 1]} : vector<128x32xf32> to vector<8x32xf32>
    %c0_42 = arith.constant 0 : index
    %c0_43 = arith.constant 0 : index
    %43 = vector.load %arg4[%c0_42, %c0_43] : memref<512x80xf32, #tpu.memory_space<vmem>>, vector<32x80xf32>
    %cst_44 = arith.constant dense<0.000000e+00> : vector<8x80xf32>
    %44 = tpu.matmul %42, %43, %cst_44 {dimension_numbers = #tpu.dot_dimension_numbers<[1], [0], [0], [1], [0, 0, 1, 1], [], []>} : vector<8x32xf32>, vector<32x80xf32>, vector<8x80xf32> -> vector<8x80xf32>
    %45 = vector.extract_strided_slice %41 {offsets = [8, 0], sizes = [8, 32], strides = [1, 1]} : vector<128x32xf32> to vector<8x32xf32>
    %c32 = arith.constant 32 : index
    %c0_45 = arith.constant 0 : index
    %46 = vector.load %arg4[%c32, %c0_45] : memref<512x80xf32, #tpu.memory_space<vmem>>, vector<32x80xf32>
    %cst_46 = arith.constant dense<0.000000e+00> : vector<8x80xf32>
    %47 = tpu.matmul %45, %46, %cst_46 {dimension_numbers = #tpu.dot_dimension_numbers<[1], [0], [0], [1], [0, 0, 1, 1], [], []>} : vector<8x32xf32>, vector<32x80xf32>, vector<8x80xf32> -> vector<8x80xf32>
    %48 = arith.addf %44, %47 : vector<8x80xf32>
    %49 = vector.extract_strided_slice %41 {offsets = [16, 0], sizes = [8, 32], strides = [1, 1]} : vector<128x32xf32> to vector<8x32xf32>
    %c64_47 = arith.constant 64 : index
    %c0_48 = arith.constant 0 : index
    %50 = vector.load %arg4[%c64_47, %c0_48] : memref<512x80xf32, #tpu.memory_space<vmem>>, vector<32x80xf32>
    %cst_49 = arith.constant dense<0.000000e+00> : vector<8x80xf32>
    %51 = tpu.matmul %49, %50, %cst_49 {dimension_numbers = #tpu.dot_dimension_numbers<[1], [0], [0], [1], [0, 0, 1, 1], [], []>} : vector<8x32xf32>, vector<32x80xf32>, vector<8x80xf32> -> vector<8x80xf32>
    %52 = arith.addf %48, %51 : vector<8x80xf32>
    %53 = vector.extract_strided_slice %41 {offsets = [24, 0], sizes = [8, 32], strides = [1, 1]} : vector<128x32xf32> to vector<8x32xf32>
    %c96 = arith.constant 96 : index
    %c0_50 = arith.constant 0 : index
    %54 = vector.load %arg4[%c96, %c0_50] : memref<512x80xf32, #tpu.memory_space<vmem>>, vector<32x80xf32>
    %cst_51 = arith.constant dense<0.000000e+00> : vector<8x80xf32>
    %55 = tpu.matmul %53, %54, %cst_51 {dimension_numbers = #tpu.dot_dimension_numbers<[1], [0], [0], [1], [0, 0, 1, 1], [], []>} : vector<8x32xf32>, vector<32x80xf32>, vector<8x80xf32> -> vector<8x80xf32>
    %56 = arith.addf %52, %55 : vector<8x80xf32>
    %57 = vector.extract_strided_slice %41 {offsets = [32, 0], sizes = [8, 32], strides = [1, 1]} : vector<128x32xf32> to vector<8x32xf32>
    %c128_52 = arith.constant 128 : index
    %c0_53 = arith.constant 0 : index
    %58 = vector.load %arg4[%c128_52, %c0_53] : memref<512x80xf32, #tpu.memory_space<vmem>>, vector<32x80xf32>
    %cst_54 = arith.constant dense<0.000000e+00> : vector<8x80xf32>
    %59 = tpu.matmul %57, %58, %cst_54 {dimension_numbers = #tpu.dot_dimension_numbers<[1], [0], [0], [1], [0, 0, 1, 1], [], []>} : vector<8x32xf32>, vector<32x80xf32>, vector<8x80xf32> -> vector<8x80xf32>
    %60 = arith.addf %56, %59 : vector<8x80xf32>
    %61 = vector.extract_strided_slice %41 {offsets = [40, 0], sizes = [8, 32], strides = [1, 1]} : vector<128x32xf32> to vector<8x32xf32>
    %c160_55 = arith.constant 160 : index
    %c0_56 = arith.constant 0 : index
    %62 = vector.load %arg4[%c160_55, %c0_56] : memref<512x80xf32, #tpu.memory_space<vmem>>, vector<32x80xf32>
    %cst_57 = arith.constant dense<0.000000e+00> : vector<8x80xf32>
    %63 = tpu.matmul %61, %62, %cst_57 {dimension_numbers = #tpu.dot_dimension_numbers<[1], [0], [0], [1], [0, 0, 1, 1], [], []>} : vector<8x32xf32>, vector<32x80xf32>, vector<8x80xf32> -> vector<8x80xf32>
    %64 = arith.addf %60, %63 : vector<8x80xf32>
    %65 = vector.extract_strided_slice %41 {offsets = [48, 0], sizes = [8, 32], strides = [1, 1]} : vector<128x32xf32> to vector<8x32xf32>
    %c192_58 = arith.constant 192 : index
    %c0_59 = arith.constant 0 : index
    %66 = vector.load %arg4[%c192_58, %c0_59] : memref<512x80xf32, #tpu.memory_space<vmem>>, vector<32x80xf32>
    %cst_60 = arith.constant dense<0.000000e+00> : vector<8x80xf32>
    %67 = tpu.matmul %65, %66, %cst_60 {dimension_numbers = #tpu.dot_dimension_numbers<[1], [0], [0], [1], [0, 0, 1, 1], [], []>} : vector<8x32xf32>, vector<32x80xf32>, vector<8x80xf32> -> vector<8x80xf32>
    %68 = arith.addf %64, %67 : vector<8x80xf32>
    %69 = vector.extract_strided_slice %41 {offsets = [56, 0], sizes = [8, 32], strides = [1, 1]} : vector<128x32xf32> to vector<8x32xf32>
    %c224 = arith.constant 224 : index
    %c0_61 = arith.constant 0 : index
    %70 = vector.load %arg4[%c224, %c0_61] : memref<512x80xf32, #tpu.memory_space<vmem>>, vector<32x80xf32>
    %cst_62 = arith.constant dense<0.000000e+00> : vector<8x80xf32>
    %71 = tpu.matmul %69, %70, %cst_62 {dimension_numbers = #tpu.dot_dimension_numbers<[1], [0], [0], [1], [0, 0, 1, 1], [], []>} : vector<8x32xf32>, vector<32x80xf32>, vector<8x80xf32> -> vector<8x80xf32>
    %72 = arith.addf %68, %71 : vector<8x80xf32>
    %73 = vector.extract_strided_slice %41 {offsets = [64, 0], sizes = [8, 32], strides = [1, 1]} : vector<128x32xf32> to vector<8x32xf32>
    %c256 = arith.constant 256 : index
    %c0_63 = arith.constant 0 : index
    %74 = vector.load %arg4[%c256, %c0_63] : memref<512x80xf32, #tpu.memory_space<vmem>>, vector<32x80xf32>
    %cst_64 = arith.constant dense<0.000000e+00> : vector<8x80xf32>
    %75 = tpu.matmul %73, %74, %cst_64 {dimension_numbers = #tpu.dot_dimension_numbers<[1], [0], [0], [1], [0, 0, 1, 1], [], []>} : vector<8x32xf32>, vector<32x80xf32>, vector<8x80xf32> -> vector<8x80xf32>
    %76 = arith.addf %72, %75 : vector<8x80xf32>
    %77 = vector.extract_strided_slice %41 {offsets = [72, 0], sizes = [8, 32], strides = [1, 1]} : vector<128x32xf32> to vector<8x32xf32>
    %c288 = arith.constant 288 : index
    %c0_65 = arith.constant 0 : index
    %78 = vector.load %arg4[%c288, %c0_65] : memref<512x80xf32, #tpu.memory_space<vmem>>, vector<32x80xf32>
    %cst_66 = arith.constant dense<0.000000e+00> : vector<8x80xf32>
    %79 = tpu.matmul %77, %78, %cst_66 {dimension_numbers = #tpu.dot_dimension_numbers<[1], [0], [0], [1], [0, 0, 1, 1], [], []>} : vector<8x32xf32>, vector<32x80xf32>, vector<8x80xf32> -> vector<8x80xf32>
    %80 = arith.addf %76, %79 : vector<8x80xf32>
    %81 = vector.extract_strided_slice %41 {offsets = [80, 0], sizes = [8, 32], strides = [1, 1]} : vector<128x32xf32> to vector<8x32xf32>
    %c320 = arith.constant 320 : index
    %c0_67 = arith.constant 0 : index
    %82 = vector.load %arg4[%c320, %c0_67] : memref<512x80xf32, #tpu.memory_space<vmem>>, vector<32x80xf32>
    %cst_68 = arith.constant dense<0.000000e+00> : vector<8x80xf32>
    %83 = tpu.matmul %81, %82, %cst_68 {dimension_numbers = #tpu.dot_dimension_numbers<[1], [0], [0], [1], [0, 0, 1, 1], [], []>} : vector<8x32xf32>, vector<32x80xf32>, vector<8x80xf32> -> vector<8x80xf32>
    %84 = arith.addf %80, %83 : vector<8x80xf32>
    %85 = vector.extract_strided_slice %41 {offsets = [88, 0], sizes = [8, 32], strides = [1, 1]} : vector<128x32xf32> to vector<8x32xf32>
    %c352 = arith.constant 352 : index
    %c0_69 = arith.constant 0 : index
    %86 = vector.load %arg4[%c352, %c0_69] : memref<512x80xf32, #tpu.memory_space<vmem>>, vector<32x80xf32>
    %cst_70 = arith.constant dense<0.000000e+00> : vector<8x80xf32>
    %87 = tpu.matmul %85, %86, %cst_70 {dimension_numbers = #tpu.dot_dimension_numbers<[1], [0], [0], [1], [0, 0, 1, 1], [], []>} : vector<8x32xf32>, vector<32x80xf32>, vector<8x80xf32> -> vector<8x80xf32>
    %88 = arith.addf %84, %87 : vector<8x80xf32>
    %89 = vector.extract_strided_slice %41 {offsets = [96, 0], sizes = [8, 32], strides = [1, 1]} : vector<128x32xf32> to vector<8x32xf32>
    %c384 = arith.constant 384 : index
    %c0_71 = arith.constant 0 : index
    %90 = vector.load %arg4[%c384, %c0_71] : memref<512x80xf32, #tpu.memory_space<vmem>>, vector<32x80xf32>
    %cst_72 = arith.constant dense<0.000000e+00> : vector<8x80xf32>
    %91 = tpu.matmul %89, %90, %cst_72 {dimension_numbers = #tpu.dot_dimension_numbers<[1], [0], [0], [1], [0, 0, 1, 1], [], []>} : vector<8x32xf32>, vector<32x80xf32>, vector<8x80xf32> -> vector<8x80xf32>
    %92 = arith.addf %88, %91 : vector<8x80xf32>
    %93 = vector.extract_strided_slice %41 {offsets = [104, 0], sizes = [8, 32], strides = [1, 1]} : vector<128x32xf32> to vector<8x32xf32>
    %c416 = arith.constant 416 : index
    %c0_73 = arith.constant 0 : index
    %94 = vector.load %arg4[%c416, %c0_73] : memref<512x80xf32, #tpu.memory_space<vmem>>, vector<32x80xf32>
    %cst_74 = arith.constant dense<0.000000e+00> : vector<8x80xf32>
    %95 = tpu.matmul %93, %94, %cst_74 {dimension_numbers = #tpu.dot_dimension_numbers<[1], [0], [0], [1], [0, 0, 1, 1], [], []>} : vector<8x32xf32>, vector<32x80xf32>, vector<8x80xf32> -> vector<8x80xf32>
    %96 = arith.addf %92, %95 : vector<8x80xf32>
    %97 = vector.extract_strided_slice %41 {offsets = [112, 0], sizes = [8, 32], strides = [1, 1]} : vector<128x32xf32> to vector<8x32xf32>
    %c448 = arith.constant 448 : index
    %c0_75 = arith.constant 0 : index
    %98 = vector.load %arg4[%c448, %c0_75] : memref<512x80xf32, #tpu.memory_space<vmem>>, vector<32x80xf32>
    %cst_76 = arith.constant dense<0.000000e+00> : vector<8x80xf32>
    %99 = tpu.matmul %97, %98, %cst_76 {dimension_numbers = #tpu.dot_dimension_numbers<[1], [0], [0], [1], [0, 0, 1, 1], [], []>} : vector<8x32xf32>, vector<32x80xf32>, vector<8x80xf32> -> vector<8x80xf32>
    %100 = arith.addf %96, %99 : vector<8x80xf32>
    %101 = vector.extract_strided_slice %41 {offsets = [120, 0], sizes = [8, 32], strides = [1, 1]} : vector<128x32xf32> to vector<8x32xf32>
    %c480 = arith.constant 480 : index
    %c0_77 = arith.constant 0 : index
    %102 = vector.load %arg4[%c480, %c0_77] : memref<512x80xf32, #tpu.memory_space<vmem>>, vector<32x80xf32>
    %cst_78 = arith.constant dense<0.000000e+00> : vector<8x80xf32>
    %103 = tpu.matmul %101, %102, %cst_78 {dimension_numbers = #tpu.dot_dimension_numbers<[1], [0], [0], [1], [0, 0, 1, 1], [], []>} : vector<8x32xf32>, vector<32x80xf32>, vector<8x80xf32> -> vector<8x80xf32>
    %104 = arith.addf %100, %103 : vector<8x80xf32>
    %c0_79 = arith.constant 0 : index
    %c0_80 = arith.constant 0 : index
    %105 = vector.load %arg5[%c0_79, %c0_80] : memref<1x80xf32, #tpu.memory_space<vmem>>, vector<1x80xf32>
    %106 = vector.broadcast %105 : vector<1x80xf32> to vector<8x80xf32>
    %107 = arith.addf %104, %106 : vector<8x80xf32>
    %108 = vector.extract_strided_slice %107 {offsets = [0, 0], sizes = [8, 32], strides = [1, 1]} : vector<8x80xf32> to vector<8x32xf32>
    %109 = vector.extract_strided_slice %107 {offsets = [0, 32], sizes = [8, 32], strides = [1, 1]} : vector<8x80xf32> to vector<8x32xf32>
    %110 = vector.extract_strided_slice %107 {offsets = [0, 64], sizes = [8, 16], strides = [1, 1]} : vector<8x80xf32> to vector<8x16xf32>
    %cst_81 = arith.constant 5.000000e-01 : f32
    %111 = vector.broadcast %cst_81 : f32 to vector<8x32xf32>
    %112 = arith.mulf %111, %109 : vector<8x32xf32>
    %113 = math.exp %112 : vector<8x32xf32>
    %c0_82 = arith.constant 0 : index
    %c0_83 = arith.constant 0 : index
    %114 = vector.load %arg6[%c0_82, %c0_83] : memref<8x32xf32, #tpu.memory_space<vmem>>, vector<8x32xf32>
    %115 = arith.mulf %113, %114 : vector<8x32xf32>
    %116 = arith.addf %108, %115 : vector<8x32xf32>
    %c0_84 = arith.constant 0 : index
    %c0_85 = arith.constant 0 : index
    %117 = vector.load %arg7[%c0_84, %c0_85] : memref<16x32xf32, #tpu.memory_space<vmem>>, vector<16x32xf32>
    %cst_86 = arith.constant dense<0.000000e+00> : vector<8x32xf32>
    %118 = tpu.matmul %110, %117, %cst_86 {dimension_numbers = #tpu.dot_dimension_numbers<[1], [0], [0], [1], [0, 0, 1, 1], [], []>} : vector<8x16xf32>, vector<16x32xf32>, vector<8x32xf32> -> vector<8x32xf32>
    %c0_87 = arith.constant 0 : index
    %c0_88 = arith.constant 0 : index
    %119 = vector.load %arg8[%c0_87, %c0_88] : memref<1x32xf32, #tpu.memory_space<vmem>>, vector<1x32xf32>
    %120 = vector.broadcast %119 : vector<1x32xf32> to vector<8x32xf32>
    %121 = arith.addf %118, %120 : vector<8x32xf32>
    %cst_89 = arith.constant 0.000000e+00 : f32
    %122 = vector.broadcast %cst_89 : f32 to vector<8x32xf32>
    %123 = arith.maximumf %121, %122 : vector<8x32xf32>
    %cst_90 = arith.constant 0.000000e+00 : f32
    %124 = vector.broadcast %cst_90 : f32 to vector<8x32xf32>
    %125 = arith.maximumf %116, %124 : vector<8x32xf32>
    %126 = tpu.concatenate %123, %125 in 1 : vector<8x32xf32>, vector<8x32xf32> -> vector<8x64xf32>
    %c0_91 = arith.constant 0 : index
    %c0_92 = arith.constant 0 : index
    %127 = vector.load %arg9[%c0_91, %c0_92] : memref<64x16xf32, #tpu.memory_space<vmem>>, vector<64x16xf32>
    %cst_93 = arith.constant dense<0.000000e+00> : vector<8x16xf32>
    %128 = tpu.matmul %126, %127, %cst_93 {dimension_numbers = #tpu.dot_dimension_numbers<[1], [0], [0], [1], [0, 0, 1, 1], [], []>} : vector<8x64xf32>, vector<64x16xf32>, vector<8x16xf32> -> vector<8x16xf32>
    %c0_94 = arith.constant 0 : index
    %c0_95 = arith.constant 0 : index
    %129 = vector.load %arg10[%c0_94, %c0_95] : memref<1x16xf32, #tpu.memory_space<vmem>>, vector<1x16xf32>
    %130 = vector.broadcast %129 : vector<1x16xf32> to vector<8x16xf32>
    %131 = arith.addf %128, %130 : vector<8x16xf32>
    %cst_96 = arith.constant 0.000000e+00 : f32
    %132 = vector.broadcast %cst_96 : f32 to vector<8x16xf32>
    %133 = arith.maximumf %131, %132 : vector<8x16xf32>
    %c0_97 = arith.constant 0 : index
    %c0_98 = arith.constant 0 : index
    %134 = vector.load %arg11[%c0_97, %c0_98] : memref<16x2xf32, #tpu.memory_space<vmem>>, vector<16x2xf32>
    %cst_99 = arith.constant dense<0.000000e+00> : vector<8x2xf32>
    %135 = tpu.matmul %133, %134, %cst_99 {dimension_numbers = #tpu.dot_dimension_numbers<[1], [0], [0], [1], [0, 0, 1, 1], [], []>} : vector<8x16xf32>, vector<16x2xf32>, vector<8x2xf32> -> vector<8x2xf32>
    %c0_100 = arith.constant 0 : index
    %c0_101 = arith.constant 0 : index
    %136 = vector.load %arg12[%c0_100, %c0_101] : memref<1x2xf32, #tpu.memory_space<vmem>>, vector<1x2xf32>
    %137 = vector.broadcast %136 : vector<1x2xf32> to vector<8x2xf32>
    %138 = arith.addf %135, %137 : vector<8x2xf32>
    %c0_102 = arith.constant 0 : index
    %c0_103 = arith.constant 0 : index
    %139 = vector.load %arg13[%c0_102, %c0_103] : memref<8x2xf32, #tpu.memory_space<vmem>>, vector<8x2xf32>
    tpu.vector_store %arg13[%c0_102, %c0_103], %138 {strides = array<i32>} : memref<8x2xf32, #tpu.memory_space<vmem>>, vector<8x2xf32>,
    return
  }
}

</mosaic_0001>

<bundles_post_ra>
// kernel: genconvit_vae_forward.1
= control target key start
LH: loop header
LB: loop body
LE: loop exit
PB: predicated region body
PF: predicated region fallthrough
CT: control target
= control target key end

     0   :  { %vm202_vm0 = vcmask 523264   ;;  %vm708_vm1 = vcmask 261120   ;;  %s1386_s21 = smov 32   ;;  %vm1175_vm2 = vcmask 130048   ;;  %vm1270_vm3 = vcmask 15360   ;;  %s2177_s1 = inlined_call_operand.vmem [shape: f32[128,64], index: 1, kind: input, shape index: {}]   ;;  %s2178_s0 = inlined_call_operand.vmem [shape: f32[200,128], index: 0, kind: input, shape index: {}]   ;;  %s2179_s2 = inlined_call_operand.vmem [shape: f32[256,32], index: 2, kind: input, shape index: {}]   ;;  %s2180_s3 = inlined_call_operand.vmem [shape: f32[1,32], index: 3, kind: input, shape index: {}]   ;;  %s2181_s4 = inlined_call_operand.vmem [shape: f32[512,80], index: 4, kind: input, shape index: {}]   ;;  %s2182_s5 = inlined_call_operand.vmem [shape: f32[1,80], index: 5, kind: input, shape index: {}]   ;;  %s2183_s7 = inlined_call_operand.vmem [shape: f32[16,32], index: 7, kind: input, shape index: {}]   ;;  %s2184_s6 = inlined_call_operand.vmem [shape: f32[8,32], index: 6, kind: input, shape index: {}]   ;;  %s2185_s8 = inlined_call_operand.vmem [shape: f32[1,32], index: 8, kind: input, shape index: {}]   ;;  %s2186_s9 = inlined_call_operand.vmem [shape: f32[64,16], index: 9, kind: input, shape index: {}]   ;;  %s2187_s10 = inlined_call_operand.vmem [shape: f32[1,16], index: 10, kind: input, shape index: {}]   ;;  %s2188_s11 = inlined_call_operand.vmem [shape: f32[16,2], index: 11, kind: input, shape index: {}]   ;;  %s2189_s12 = inlined_call_operand.vmem [shape: f32[1,2], index: 12, kind: input, shape index: {}]   ;;  %s2190_s13 = inlined_call_operand.vmem [shape: f32[8,2], index: 13, kind: output, shape index: {}]  }
   0x1   :  { %v84_v0 = vld [vmem:[%s2177_s1 + $0x78] sm:$0xff]  ;;  %v83_v1 = vld [vmem:[%s2177_s1 + $0x70] sm:$0xff]  ;;  %v82_v2 = vld [vmem:[%s2177_s1 + $0x68] sm:$0xff] }
   0x2   :  { %85 = vmatpush.msra.mxu0 %v84_v0  ;;  %v81_v3 = vld [vmem:[%s2177_s1 + $0x60] sm:$0xff]  ;;  %v80_v4 = vld [vmem:[%s2177_s1 + $0x58] sm:$0xff]  ;;  %v79_v5 = vld [vmem:[%s2177_s1 + $0x50] sm:$0xff] }
   0x3   :  { %v78_v6 = vld [vmem:[%s2177_s1 + $0x48] sm:$0xff]  ;;  %v77_v7 = vld [vmem:[%s2177_s1 + $0x40] sm:$0xff]  ;;  %v76_v8 = vld [vmem:[%s2177_s1 + $0x38] sm:$0xff] }
   0x4   :  { %86 = vmatpush.msra.mxu0 %v83_v1  ;;  %v75_v9 = vld [vmem:[%s2177_s1 + $0x30] sm:$0xff]  ;;  %v74_v10 = vld [vmem:[%s2177_s1 + $0x28] sm:$0xff]  ;;  %v73_v11 = vld [vmem:[%s2177_s1 + $0x20] sm:$0xff] }
   0x5   :  { %v72_v12 = vld [vmem:[%s2177_s1 + $0x18] sm:$0xff]  ;;  %v71_v13 = vld [vmem:[%s2177_s1 + $0x10] sm:$0xff]  ;;  %v70_v14 = vld [vmem:[%s2177_s1 + $0x8] sm:$0xff] }
   0x6   :  { %87 = vmatpush.msra.mxu0 %v82_v2  ;;  %v69_v15 = vld [vmem:[%s2177_s1] sm:$0xff]  ;;  %v45_v17 = vld [vmem:[%s2178_s0 + $0x8] sm:$0xff]  ;;  %v46_v18 = vld [vmem:[%s2178_s0 + $0x10] sm:$0xff] }
   0x7   :  { %v44_v16 = vld [vmem:[%s2178_s0] sm:$0xff]  ;;  %v47_v19 = vld [vmem:[%s2178_s0 + $0x18] sm:$0xff]  ;;  %v49_v21 = vld [vmem:[%s2178_s0 + $0x28] sm:$0xff] }
   0x8   :  { %88 = vmatpush.msra.mxu0 %v81_v3  ;;  %v48_v20 = vld [vmem:[%s2178_s0 + $0x20] sm:$0xff]  ;;  %v50_v22 = vld [vmem:[%s2178_s0 + $0x30] sm:$0xff]  ;;  %v51_v23 = vld [vmem:[%s2178_s0 + $0x38] sm:$0xff] }
   0x9   :  { %v52_v24 = vld [vmem:[%s2178_s0 + $0x40] sm:$0xff]  ;;  %v53_v25 = vld [vmem:[%s2178_s0 + $0x48] sm:$0xff]  ;;  %v54_v26 = vld [vmem:[%s2178_s0 + $0x50] sm:$0xff] }
   0xa   :  { %89 = vmatpush.msra.mxu0 %v80_v4  ;;  %v55_v27 = vld [vmem:[%s2178_s0 + $0x58] sm:$0xff]  ;;  %v56_v28 = vld [vmem:[%s2178_s0 + $0x60] sm:$0xff]  ;;  %v262_v30 = vld [vmem:[%s2179_s2 + $0x70] sm:$0xff] }
   0xb   :  { %v263_v29 = vld [vmem:[%s2179_s2 + $0x78] sm:$0xff]  ;;  %v261_v31 = vld [vmem:[%s2179_s2 + $0x68] sm:$0xff]  ;;  %v260_v33 = vld [vmem:[%s2179_s2 + $0x60] sm:$0xff] }
   0xc   :  { %90 = vmatpush.msra.mxu0 %v79_v5  ;;  %320 = vmatpush.msra.mxu1 %v263_v29  ;;  %v57_v32 = vld [vmem:[%s2178_s0 + $0x68] sm:$0xff]  ;;  %v259_v34 = vld [vmem:[%s2179_s2 + $0x58] sm:$0xff]  ;;  %v258_v35 = vld [vmem:[%s2179_s2 + $0x50] sm:$0xff] }
   0xd   :  { %1359 = vmatpush.msra.mxu2 %v263_v29  ;;  %1360 = vmatpush.msra.mxu3 %v263_v29  ;;  %v257_v36 = vld [vmem:[%s2179_s2 + $0x48] sm:$0xff]  ;;  %v58_v37 = vld [vmem:[%s2178_s0 + $0x70] sm:$0xff]  ;;  %v256_v38 = vld [vmem:[%s2179_s2 + $0x40] sm:$0xff] }
   0xe   :  { %91 = vmatpush.msra.mxu0 %v78_v6  ;;  %321 = vmatpush.msra.mxu1 %v262_v30  ;;  %v59_v39 = vld [vmem:[%s2178_s0 + $0x78] sm:$0xff]  ;;  %v60_v41 = vld [vmem:[%s2178_s0 + $0x80] sm:$0xff]  ;;  %v61_v44 = vld [vmem:[%s2178_s0 + $0x88] sm:$0xff] }
   0xf   :  { %1361 = vmatpush.msra.mxu2 %v262_v30  ;;  %1362 = vmatpush.msra.mxu3 %v262_v30  ;;  %v62_v47 = vld [vmem:[%s2178_s0 + $0x90] sm:$0xff]  ;;  %v63_v51 = vld [vmem:[%s2178_s0 + $0x98] sm:$0xff]  ;;  %v249_v30 = vld [vmem:[%s2179_s2 + $0x28] sm:$0xff] }
  0x10   :  { %92 = vmatpush.msra.mxu0 %v77_v7  ;;  %322 = vmatpush.msra.mxu1 %v261_v31  ;;  %v570_v62 = vld [vmem:[%s2179_s2 + $0xf8] sm:$0xff]  ;;  %v569_v2 = vld [vmem:[%s2179_s2 + $0xf0] sm:$0xff] }
  0x11   :  { %1363 = vmatpush.msra.mxu2 %v261_v31  ;;  %1364 = vmatpush.msra.mxu3 %v261_v31  ;;  %v250_v29 = vld [vmem:[%s2179_s2 + $0x30] sm:$0xff] }
  0x12   :  { %93 = vmatpush.msra.mxu0 %v76_v8  ;;  %323 = vmatpush.msra.mxu1 %v260_v33 }
  0x13   :  { %1365 = vmatpush.msra.mxu2 %v260_v33  ;;  %1366 = vmatpush.msra.mxu3 %v260_v33  ;;  %v248_v33 = vld [vmem:[%s2179_s2 + $0x20] sm:$0xff] }
  0x14   :  { %94 = vmatpush.msra.mxu0 %v75_v9  ;;  %324 = vmatpush.msra.mxu1 %v259_v34  ;;  %v568_v9 = vld [vmem:[%s2179_s2 + $0xe8] sm:$0xff] }
  0x15   :  { %1367 = vmatpush.msra.mxu2 %v259_v34  ;;  %1368 = vmatpush.msra.mxu3 %v259_v34 }
  0x16   :  { %95 = vmatpush.msra.mxu0 %v74_v10  ;;  %325 = vmatpush.msra.mxu1 %v258_v35 }
  0x17   :  { %1369 = vmatpush.msra.mxu2 %v258_v35  ;;  %1370 = vmatpush.msra.mxu3 %v258_v35  ;;  %v66_v35 = vld [vmem:[%s2178_s0 + $0xb0] sm:$0xff] }
  0x18   :  { %96 = vmatpush.msra.mxu0 %v73_v11  ;;  %326 = vmatpush.msra.mxu1 %v257_v36 }
  0x19   :  { %1371 = vmatpush.msra.mxu2 %v257_v36  ;;  %1372 = vmatpush.msra.mxu3 %v257_v36  ;;  %v247_v36 = vld [vmem:[%s2179_s2 + $0x18] sm:$0xff] }
  0x1a   :  { %97 = vmatpush.msra.mxu0 %v72_v12  ;;  %327 = vmatpush.msra.mxu1 %v256_v38 }
  0x1b   :  { %1373 = vmatpush.msra.mxu2 %v256_v38  ;;  %1374 = vmatpush.msra.mxu3 %v256_v38  ;;  %v245_v38 = vld [vmem:[%s2179_s2 + $0x8] sm:$0xff] }
  0x1c   :  { %98 = vmatpush.msra.mxu0 %v71_v13  ;;  %591 = vmatpush.msrb.mxu1 %v570_v62  ;;  %v567_v13 = vld [vmem:[%s2179_s2 + $0xe0] sm:$0xff] }
  0x1e   :  { %99 = vmatpush.msra.mxu0 %v70_v14  ;;  %592 = vmatpush.msrb.mxu1 %v569_v2 }
  0x20   :  { %100 = vmatpush.msra.mxu0 %v69_v15  ;;  %593 = vmatpush.msrb.mxu1 %v568_v9 }
  0x21   :  { %101 = vmatmul.f32.vlgmr.msra.gmra.mxu0 %v44_v16  ;;  %v566_v16 = vld [vmem:[%s2179_s2 + $0xd8] sm:$0xff] }
  0x22   :  { %594 = vmatpush.msrb.mxu1 %v567_v13 }
  0x24   :  { %595 = vmatpush.msrb.mxu1 %v566_v16 }
  0x29   :  { %104 = vmatmul.f32.gmra.mxu0 %v45_v17  ;;  %v565_v17 = vld [vmem:[%s2179_s2 + $0xd0] sm:$0xff] }
  0x2a   :  { %596 = vmatpush.msrb.mxu1 %v565_v17 }
  0x31   :  { %107 = vmatmul.f32.gmra.mxu0 %v46_v18  ;;  %v564_v18 = vld [vmem:[%s2179_s2 + $0xc8] sm:$0xff] }
  0x32   :  { %597 = vmatpush.msrb.mxu1 %v564_v18 }
  0x39   :  { %110 = vmatmul.f32.gmra.mxu0 %v47_v19 }
  0x41   :  { %113 = vmatmul.f32.gmra.mxu0 %v48_v20 }
  0x49   :  { %116 = vmatmul.f32.gmra.mxu0 %v49_v21  ;;  %v563_v21 = vld [vmem:[%s2179_s2 + $0xc0] sm:$0xff] }
  0x4a   :  { %598 = vmatpush.msrb.mxu1 %v563_v21 }
  0x51   :  { %119 = vmatmul.f32.gmra.mxu0 %v50_v22 }
  0x59   :  { %122 = vmatmul.f32.gmra.mxu0 %v51_v23  ;;  %v64_v23 = vld [vmem:[%s2178_s0 + $0xa0] sm:$0xff] }
  0x61   :  { %125 = vmatmul.f32.gmra.mxu0 %v52_v24 }
  0x69   :  { %128 = vmatmul.f32.gmra.mxu0 %v53_v25 }
  0x71   :  { %131 = vmatmul.f32.gmra.mxu0 %v54_v26 }
  0x79   :  { %134 = vmatmul.f32.gmra.mxu0 %v55_v27  ;;  %v65_v27 = vld [vmem:[%s2178_s0 + $0xa8] sm:$0xff] }
  0x81   :  { %137 = vmatmul.f32.gmra.mxu0 %v56_v28  ;;  %v251_v28 = vld [vmem:[%s2179_s2 + $0x38] sm:$0xff] }
  0x82   :  { %397 = vmatpush.msrb.mxu2 %v251_v28 }
  0x84   :  { %398 = vmatpush.msrb.mxu2 %v250_v29 }
  0x86   :  { %399 = vmatpush.msrb.mxu2 %v249_v30 }
  0x88   :  { %400 = vmatpush.msrb.mxu2 %v248_v33 }
  0x89   :  { %140 = vmatmul.f32.gmra.mxu0 %v57_v32 }
  0x8a   :  { %401 = vmatpush.msrb.mxu2 %v247_v36 }
  0x91   :  { %143 = vmatmul.f32.gmra.mxu0 %v58_v37  ;;  %v246_v37 = vld [vmem:[%s2179_s2 + $0x10] sm:$0xff] }
  0x92   :  { %402 = vmatpush.msrb.mxu2 %v246_v37 }
  0x94   :  { %403 = vmatpush.msrb.mxu2 %v245_v38  ;;  %v701_v38 = vld [vmem:[%s2181_s4 + $0x8] sm:$0xff] }
  0x99   :  { %146 = vmatmul.f32.gmra.mxu0 %v59_v39 }
  0x9e   :  { %v102_v40 = vpop.f32.mrf.mxu0 }
  0x9f   :  { %v177_v42 = vmax.f32 %v102_v40, 0.0 }
  0xa1   :  { %203 = vst.msk [vmem:[#allocation2] sm:$0xff] %vm202_vm0, %v177_v42  ;;  %149 = vmatmul.f32.gmra.mxu0 %v60_v41  ;;  %v244_v41 = vld [vmem:[%s2179_s2] sm:$0xff] }
  0xa2   :  { %404 = vmatpush.msrb.mxu2 %v244_v41  ;;  %v700_v41 = vld [vmem:[%s2181_s4] sm:$0xff] }
  0xa6   :  { %v105_v43 = vpop.f32.mrf.mxu0 }
  0xa7   :  { %v178_v45 = vmax.f32 %v105_v43, 0.0  ;;  %v67_v43 = vld [vmem:[%s2178_s0 + $0xb8] sm:$0xff] }
  0xa9   :  { %204 = vst.msk [vmem:[#allocation2 + $0x8] sm:$0xff] %vm202_vm0, %v178_v45  ;;  %152 = vmatmul.f32.gmra.mxu0 %v61_v44  ;;  %v465_v44 = vld [vmem:[%s2179_s2 + $0xb8] sm:$0xff]  ;;  %v464_v45 = vld [vmem:[%s2179_s2 + $0xb0] sm:$0xff] }
  0xaa   :  { %486 = vmatpush.msrb.mxu3 %v465_v44 }
  0xac   :  { %487 = vmatpush.msrb.mxu3 %v464_v45  ;;  %v704_v45 = vld [vmem:[%s2181_s4 + $0x20] sm:$0xff] }
  0xae   :  { %v108_v46 = vpop.f32.mrf.mxu0 }
  0xaf   :  { %v179_v48 = vmax.f32 %v108_v46, 0.0  ;;  %v463_v46 = vld [vmem:[%s2179_s2 + $0xa8] sm:$0xff] }
  0xb0   :  { %v1589_v49 = vld [vmem:[#allocation2 + $0x8] sm:$0xff]  ;;  %488 = vmatpush.msrb.mxu3 %v463_v46  ;;  %v758_v46 = vld [vmem:[%s2181_s4 + $0x58] sm:$0xff] }
  0xb1   :  { %205 = vst.msk [vmem:[#allocation2 + $0x10] sm:$0xff] %vm202_vm0, %v179_v48  ;;  %155 = vmatmul.f32.gmra.mxu0 %v62_v47  ;;  %1276 = vmatmul.msk.f32.vlgmr.msra.gmra.mxu1 %vm202_vm0, %v1589_v49  ;;  %v462_v48 = vld [vmem:[%s2179_s2 + $0xa0] sm:$0xff] }
  0xb2   :  { %489 = vmatpush.msrb.mxu3 %v462_v48  ;;  %v756_v48 = vld [vmem:[%s2181_s4 + $0x48] sm:$0xff] }
  0xb6   :  { %v111_v50 = vpop.f32.mrf.mxu0 }
  0xb7   :  { %v180_v52 = vmax.f32 %v111_v50, 0.0  ;;  %v68_v50 = vld [vmem:[%s2178_s0 + $0xc0] sm:$0xff] }
  0xb8   :  { %v1597_v53 = vld [vmem:[#allocation2 + $0x10] sm:$0xff] }
  0xb9   :  { %206 = vst.msk [vmem:[#allocation2 + $0x18] sm:$0xff] %vm202_vm0, %v180_v52  ;;  %158 = vmatmul.f32.gmra.mxu0 %v63_v51  ;;  %1277 = vmatmul.msk.f32.gmra.mxu1 %vm202_vm0, %v1597_v53  ;;  %v461_v52 = vld [vmem:[%s2179_s2 + $0x98] sm:$0xff] }
  0xba   :  { %490 = vmatpush.msrb.mxu3 %v461_v52 }
  0xbe   :  { %v114_v54 = vpop.f32.mrf.mxu0 }
  0xbf   :  { %v181_v55 = vmax.f32 %v114_v54, 0.0  ;;  %v460_v54 = vld [vmem:[%s2179_s2 + $0x90] sm:$0xff] }
  0xc0   :  { %v1602_v56 = vld [vmem:[#allocation2 + $0x18] sm:$0xff]  ;;  %491 = vmatpush.msrb.mxu3 %v460_v54  ;;  %v755_v54 = vld [vmem:[%s2181_s4 + $0x40] sm:$0xff] }
  0xc1   :  { %207 = vst.msk [vmem:[#allocation2 + $0x20] sm:$0xff] %vm202_vm0, %v181_v55  ;;  %1278 = vmatmul.msk.f32.gmra.mxu1 %vm202_vm0, %v1602_v56  ;;  %161 = vmatmul.f32.gmra.mxu0 %v64_v23  ;;  %v459_v55 = vld [vmem:[%s2179_s2 + $0x88] sm:$0xff] }
  0xc2   :  { %492 = vmatpush.msrb.mxu3 %v459_v55  ;;  %v786_v55 = vld [vmem:[%s2181_s4 + $0x78] sm:$0xff] }
  0xc6   :  { %v117_v57 = vpop.f32.mrf.mxu0 }
  0xc7   :  { %v182_v58 = vmax.f32 %v117_v57, 0.0 }
  0xc8   :  { %v252_v59 = vld [vmem:[#allocation2 + $0x20] sm:$0xff] }
  0xc9   :  { %208 = vst.msk [vmem:[#allocation2 + $0x28] sm:$0xff] %vm202_vm0, %v182_v58  ;;  %1279 = vmatmul.msk.f32.gmra.mxu1 %vm202_vm0, %v252_v59  ;;  %164 = vmatmul.f32.gmra.mxu0 %v65_v27  ;;  %v458_v58 = vld [vmem:[%s2179_s2 + $0x80] sm:$0xff] }
  0xca   :  { %493 = vmatpush.msrb.mxu3 %v458_v58  ;;  %v784_v58 = vld [vmem:[%s2181_s4 + $0x68] sm:$0xff] }
  0xce   :  { %v120_v60 = vpop.f32.mrf.mxu0 }
  0xcf   :  { %v183_v61 = vmax.f32 %v120_v60, 0.0 }
  0xd1   :  { %209 = vst.msk [vmem:[#allocation2 + $0x30] sm:$0xff] %vm202_vm0, %v183_v61  ;;  %167 = vmatmul.f32.gmra.mxu0 %v66_v35 }
  0xd6   :  { %v123_v63 = vpop.f32.mrf.mxu0 }
  0xd7   :  { %v184_v0 = vmax.f32 %v123_v63, 0.0 }
  0xd8   :  { %v1613_v1 = vld [vmem:[#allocation2 + $0x30] sm:$0xff] }
  0xd9   :  { %210 = vst.msk [vmem:[#allocation2 + $0x38] sm:$0xff] %vm202_vm0, %v184_v0  ;;  %1280 = vmatmul.msk.f32.gmra.mxu1 %vm202_vm0, %v1613_v1  ;;  %170 = vmatmul.f32.gmra.mxu0 %v67_v43 }
  0xde   :  { %v126_v3 = vpop.f32.mrf.mxu0 }
  0xdf   :  { %v185_v4 = vmax.f32 %v126_v3, 0.0 }
  0xe0   :  { %v1621_v5 = vld [vmem:[#allocation2 + $0x38] sm:$0xff] }
  0xe1   :  { %211 = vst.msk [vmem:[#allocation2 + $0x40] sm:$0xff] %vm202_vm0, %v185_v4  ;;  %1281 = vmatmul.msk.f32.gmra.mxu1 %vm202_vm0, %v1621_v5  ;;  %173 = vmatmul.f32.gmra.mxu0 %v68_v50  ;;  %v228_v4 = vld [vmem:[#allocation2] sm:$0xff] }
  0xe6   :  { %v129_v6 = vpop.f32.mrf.mxu0 }
  0xe7   :  { %v186_v7 = vmax.f32 %v129_v6, 0.0 }
  0xe8   :  { %v1626_v8 = vld [vmem:[#allocation2 + $0x40] sm:$0xff] }
  0xe9   :  { %212 = vst.msk [vmem:[#allocation2 + $0x48] sm:$0xff] %vm202_vm0, %v186_v7  ;;  %1282 = vmatmul.msk.f32.gmra.mxu1 %vm202_vm0, %v1626_v8 }
  0xee   :  { %v132_v10 = vpop.f32.mrf.mxu0 }
  0xef   :  { %v187_v11 = vmax.f32 %v132_v10, 0.0  ;;  %v232_v10 = vld [vmem:[#allocation2 + $0x28] sm:$0xff] }
  0xf0   :  { %v1634_v12 = vld [vmem:[#allocation2 + $0x48] sm:$0xff] }
  0xf1   :  { %213 = vst.msk [vmem:[#allocation2 + $0x50] sm:$0xff] %vm202_vm0, %v187_v11  ;;  %1283 = vmatmul.msk.f32.gmra.mxu1 %vm202_vm0, %v1634_v12 }
  0xf6   :  { %v135_v14 = vpop.f32.mrf.mxu0 }
  0xf7   :  { %v188_v15 = vmax.f32 %v135_v14, 0.0 }
  0xf9   :  { %214 = vst.msk [vmem:[#allocation2 + $0x58] sm:$0xff] %vm202_vm0, %v188_v15 }
  0xfe   :  { %v138_v19 = vpop.f32.mrf.mxu0 }
  0xff   :  { %v189_v20 = vmax.f32 %v138_v19, 0.0 }
 0x100   :  { %v1655_v22 = vld [vmem:[#allocation2 + $0x58] sm:$0xff] }
 0x101   :  { %215 = vst.msk [vmem:[#allocation2 + $0x60] sm:$0xff] %vm202_vm0, %v189_v20  ;;  %1284 = vmatmul.msk.f32.gmra.mxu1 %vm202_vm0, %v1655_v22 }
 0x106   :  { %v141_v24 = vpop.f32.mrf.mxu0 }
 0x107   :  { %v190_v25 = vmax.f32 %v141_v24, 0.0  ;;  %v706_v24 = vld [vmem:[%s2181_s4 + $0x30] sm:$0xff] }
 0x108   :  { %v1663_v26 = vld [vmem:[#allocation2 + $0x60] sm:$0xff] }
 0x109   :  { %216 = vst.msk [vmem:[#allocation2 + $0x68] sm:$0xff] %vm202_vm0, %v190_v25  ;;  %1285 = vmatmul.msk.f32.gmra.mxu1 %vm202_vm0, %v1663_v26  ;;  %v702_v25 = vld [vmem:[%s2181_s4 + $0x10] sm:$0xff] }
 0x10e   :  { %v144_v31 = vpop.f32.mrf.mxu0 }
 0x10f   :  { %v191_v32 = vmax.f32 %v144_v31, 0.0 }
 0x110   :  { %v1683_v34 = vld [vmem:[#allocation2 + $0x68] sm:$0xff] }
 0x111   :  { %217 = vst.msk [vmem:[#allocation2 + $0x70] sm:$0xff] %vm202_vm0, %v191_v32  ;;  %1286 = vmatmul.msk.f32.gmra.mxu1 %vm202_vm0, %v1683_v34 }
 0x116   :  { %v147_v39 = vpop.f32.mrf.mxu0 }
 0x117   :  { %v192_v40 = vmax.f32 %v147_v39, 0.0  ;;  %v705_v39 = vld [vmem:[%s2181_s4 + $0x28] sm:$0xff] }
 0x118   :  { %v1703_v42 = vld [vmem:[#allocation2 + $0x70] sm:$0xff] }
 0x119   :  { %218 = vst.msk [vmem:[#allocation2 + $0x78] sm:$0xff] %vm202_vm0, %v192_v40  ;;  %1287 = vmatmul.msk.f32.gmra.mxu1 %vm202_vm0, %v1703_v42 }
 0x11e   :  { %v150_v47 = vpop.f32.mrf.mxu0 }
 0x11f   :  { %v193_v51 = vmax.f32 %v150_v47, 0.0  ;;  %v757_v47 = vld [vmem:[%s2181_s4 + $0x50] sm:$0xff] }
 0x120   :  { %v240_v19 = vld [vmem:[#allocation2 + $0x78] sm:$0xff] }
 0x121   :  { %219 = vst.msk [vmem:[#allocation2 + $0x80] sm:$0xff] %vm202_vm0, %v193_v51  ;;  %1324 = vmatmul.msk.f32.vlgmr.msrb.gmra.mxu1 %vm202_vm0, %v1613_v1 }
 0x126   :  { %v153_v57 = vpop.f32.mrf.mxu0 }
 0x127   :  { %v194_v59 = vmax.f32 %v153_v57, 0.0  ;;  %v785_v57 = vld [vmem:[%s2181_s4 + $0x70] sm:$0xff] }
 0x128   :  { %v1741_v60 = vld [vmem:[#allocation2 + $0x80] sm:$0xff] }
 0x129   :  { %220 = vst.msk [vmem:[#allocation2 + $0x88] sm:$0xff] %vm202_vm0, %v194_v59  ;;  %1288 = vmatmul.msk.f32.vlgmr.msra.gmra.mxu2 %vm202_vm0, %v1741_v60  ;;  %1325 = vmatmul.msk.f32.gmra.mxu1 %vm202_vm0, %v1621_v5 }
 0x12e   :  { %v156_v61 = vpop.f32.mrf.mxu0  ;;  %v1763_v6 = vpop.f32.mrf.mxu1 }
 0x12f   :  { %v195_v62 = vmax.f32 %v156_v61, 0.0 }
 0x130   :  { %v1748_v63 = vld [vmem:[#allocation2 + $0x88] sm:$0xff] }
 0x131   :  { %221 = vst.msk [vmem:[#allocation2 + $0x90] sm:$0xff] %vm202_vm0, %v195_v62  ;;  %1289 = vmatmul.msk.f32.gmra.mxu2 %vm202_vm0, %v1748_v63  ;;  %1326 = vmatmul.msk.f32.gmra.mxu1 %vm202_vm0, %v1626_v8  ;;  %v783_v62 = vld [vmem:[%s2181_s4 + $0x60] sm:$0xff] }
 0x136   :  { %v159_v0 = vpop.f32.mrf.mxu0  ;;  %v1770_v9 = vpop.f32.mrf.mxu1 }
 0x137   :  { %v196_v2 = vmax.f32 %v159_v0, 0.0 }
 0x138   :  { %v1755_v3 = vld [vmem:[#allocation2 + $0x90] sm:$0xff] }
 0x139   :  { %222 = vst.msk [vmem:[#allocation2 + $0x98] sm:$0xff] %vm202_vm0, %v196_v2  ;;  %1290 = vmatmul.msk.f32.vlgmr.msra.gmra.mxu3 %vm202_vm0, %v1755_v3  ;;  %1292 = vmatmul.msk.f32.vlgmr.msrb.gmra.mxu2 %vm202_vm0, %v228_v4  ;;  %v1924_v2 = vld [vmem:[%s2180_s3] ss:$0 sm:$0xff] }
 0x13a   :  { %1327 = vmatmul.msk.f32.gmra.mxu1 %vm202_vm0, %v1634_v12 }
 0x13e   :  { %v1777_v11 = vpop.f32.mrf.mxu1 }
 0x140   :  { %v255_v7 = vld [vmem:[#allocation2 + $0x98] sm:$0xff] }
 0x141   :  { %1291 = vmatmul.msk.f32.gmra.mxu3 %vm202_vm0, %v255_v7  ;;  %1293 = vmatmul.msk.f32.gmra.mxu2 %vm202_vm0, %v1589_v49 }
 0x142   :  { %1328 = vmatmul.msk.f32.gmra.mxu1 %vm202_vm0, %v1655_v22 }
 0x146   :  { %v1785_v49 = vpop.f32.mrf.mxu1 }
 0x149   :  { %1294 = vmatmul.msk.f32.gmra.mxu2 %vm202_vm0, %v1597_v53  ;;  %1308 = vmatmul.msk.f32.vlgmr.msrb.gmra.mxu3 %vm202_vm0, %v232_v10 }
 0x14a   :  { %1329 = vmatmul.msk.f32.gmra.mxu1 %vm202_vm0, %v1663_v26 }
 0x151   :  { %1295 = vmatmul.msk.f32.gmra.mxu2 %vm202_vm0, %v1602_v56  ;;  %1309 = vmatmul.msk.f32.gmra.mxu3 %vm202_vm0, %v1613_v1  ;;  %v236_v56 = vld [vmem:[#allocation2 + $0x50] sm:$0xff] }
 0x152   :  { %1330 = vmatmul.msk.f32.gmra.mxu1 %vm202_vm0, %v1683_v34 }
 0x156   :  { %v1792_v53 = vpop.f32.mrf.mxu1 }
 0x159   :  { %1296 = vmatmul.msk.f32.gmra.mxu2 %vm202_vm0, %v232_v10  ;;  %1310 = vmatmul.msk.f32.gmra.mxu3 %vm202_vm0, %v1621_v5 }
 0x15a   :  { %1331 = vmatmul.msk.f32.gmra.mxu1 %vm202_vm0, %v1703_v42 }
 0x15e   :  { %v1805_v12 = vpop.f32.mrf.mxu1 }
 0x161   :  { %1297 = vmatmul.msk.f32.gmra.mxu2 %vm202_vm0, %v1613_v1  ;;  %1311 = vmatmul.msk.f32.gmra.mxu3 %vm202_vm0, %v1626_v8  ;;  %v707_v1 = vld [vmem:[%s2181_s4 + $0x38] sm:$0xff] }
 0x162   :  { %1332 = vmatmul.msk.f32.gmra.mxu1 %vm202_vm0, %v1741_v60  ;;  %724 = vmatpush.msra.mxu2 %v707_v1 }
 0x164   :  { %725 = vmatpush.msra.mxu2 %v706_v24 }
 0x166   :  { %v1819_v13 = vpop.f32.mrf.mxu1  ;;  %726 = vmatpush.msra.mxu2 %v705_v39 }
 0x168   :  { %727 = vmatpush.msra.mxu2 %v704_v45 }
 0x169   :  { %1298 = vmatmul.msk.f32.gmra.mxu2 %vm202_vm0, %v1621_v5  ;;  %1312 = vmatmul.msk.f32.gmra.mxu3 %vm202_vm0, %v236_v56  ;;  %v703_v5 = vld [vmem:[%s2181_s4 + $0x18] sm:$0xff] }
 0x16a   :  { %1333 = vmatmul.msk.f32.gmra.mxu1 %vm202_vm0, %v1748_v63  ;;  %747 = vmatpush.msra.mxu3 %v703_v5  ;;  %v842_v5 = vld [vmem:[%s2181_s4 + $0xb8] sm:$0xff] }
 0x16b   :  { %774 = vmatpush.msrb.mxu2 %v758_v46  ;;  %v867_v46 = vld [vmem:[%s2181_s4 + $0xc0] sm:$0xff] }
 0x16c   :  { %748 = vmatpush.msra.mxu3 %v702_v25  ;;  %v839_v25 = vld [vmem:[%s2181_s4 + $0xa0] sm:$0xff] }
 0x16d   :  { %775 = vmatpush.msrb.mxu2 %v757_v47 }
 0x16e   :  { %v1825_v14 = vpop.f32.mrf.mxu1  ;;  %749 = vmatpush.msra.mxu3 %v701_v38 }
 0x16f   :  { %776 = vmatpush.msrb.mxu2 %v756_v48 }
 0x170   :  { %750 = vmatpush.msra.mxu3 %v700_v41 }
 0x171   :  { %1299 = vmatmul.msk.f32.gmra.mxu2 %vm202_vm0, %v1626_v8  ;;  %1313 = vmatmul.msk.f32.gmra.mxu3 %vm202_vm0, %v1655_v22  ;;  %v162_v8 = vpop.f32.mrf.mxu0 }
 0x172   :  { %1334 = vmatmul.msk.f32.gmra.mxu1 %vm202_vm0, %v1755_v3  ;;  %v197_v15 = vmax.f32 %v162_v8, 0.0  ;;  %777 = vmatpush.msrb.mxu2 %v755_v54 }
 0x173   :  { %802 = vmatpush.msrb.mxu3 %v786_v55 }
 0x174   :  { %223 = vst.msk [vmem:[#allocation2 + $0xa0] sm:$0xff] %vm202_vm0, %v197_v15 }
 0x175   :  { %803 = vmatpush.msrb.mxu3 %v785_v57 }
 0x177   :  { %804 = vmatpush.msrb.mxu3 %v784_v58  ;;  %v897_v58 = vld [vmem:[%s2181_s4 + $0xf0] sm:$0xff] }
 0x179   :  { %1300 = vmatmul.msk.f32.gmra.mxu2 %vm202_vm0, %v236_v56  ;;  %1314 = vmatmul.msk.f32.gmra.mxu3 %vm202_vm0, %v1663_v26  ;;  %v165_v16 = vpop.f32.mrf.mxu0 }
 0x17a   :  { %1335 = vmatmul.msk.f32.gmra.mxu1 %vm202_vm0, %v255_v7  ;;  %v198_v18 = vmax.f32 %v165_v16, 0.0  ;;  %805 = vmatpush.msrb.mxu3 %v783_v62  ;;  %v841_v16 = vld [vmem:[%s2181_s4 + $0xb0] sm:$0xff] }
 0x17c   :  { %224 = vst.msk [vmem:[#allocation2 + $0xa8] sm:$0xff] %vm202_vm0, %v198_v18 }
 0x17e   :  { %v1832_v17 = vpop.f32.mrf.mxu1 }
 0x181   :  { %1301 = vmatmul.msk.f32.gmra.mxu2 %vm202_vm0, %v1655_v22  ;;  %1315 = vmatmul.msk.f32.gmra.mxu3 %vm202_vm0, %v1683_v34  ;;  %v168_v20 = vpop.f32.mrf.mxu0 }
 0x182   :  { %v199_v21 = vmax.f32 %v168_v20, 0.0 }
 0x183   :  { %v455_v23 = vld [vmem:[#allocation2 + $0xa8] sm:$0xff] }
 0x184   :  { %225 = vst.msk [vmem:[#allocation2 + $0xb0] sm:$0xff] %vm202_vm0, %v199_v21  ;;  %1336 = vmatmul.msk.f32.gmra.mxu1 %vm202_vm0, %v455_v23  ;;  %v814_v21 = vld [vmem:[%s2181_s4 + $0x98] sm:$0xff] }
 0x186   :  { %v1838_v22 = vpop.f32.mrf.mxu1 }
 0x189   :  { %1302 = vmatmul.msk.f32.gmra.mxu2 %vm202_vm0, %v1663_v26  ;;  %1316 = vmatmul.msk.f32.gmra.mxu3 %vm202_vm0, %v240_v19  ;;  %v171_v26 = vpop.f32.mrf.mxu0 }
 0x18a   :  { %v200_v27 = vmax.f32 %v171_v26, 0.0 }
 0x18b   :  { %v456_v28 = vld [vmem:[#allocation2 + $0xb0] sm:$0xff] }
 0x18c   :  { %226 = vst.msk [vmem:[#allocation2 + $0xb8] sm:$0xff] %vm202_vm0, %v200_v27  ;;  %1337 = vmatmul.msk.f32.gmra.mxu1 %vm202_vm0, %v456_v28  ;;  %v813_v27 = vld [vmem:[%s2181_s4 + $0x90] sm:$0xff] }
 0x18e   :  { %v1857_v29 = vpop.f32.mrf.mxu1 }
 0x191   :  { %1303 = vmatmul.msk.f32.gmra.mxu2 %vm202_vm0, %v1683_v34  ;;  %1317 = vmatmul.msk.f32.gmra.mxu3 %vm202_vm0, %v1741_v60  ;;  %v174_v30 = vpop.f32.mrf.mxu0  ;;  %v454_v34 = vld [vmem:[#allocation2 + $0xa0] sm:$0xff] }
 0x192   :  { %v201_v31 = vmax.f32 %v174_v30, 0.0 }
 0x193   :  { %v457_v32 = vld [vmem:[#allocation2 + $0xb8] sm:$0xff] }
 0x194   :  { %227 = vst.msk [vmem:[#allocation2 + $0xc0] sm:$0xff] %vm202_vm0, %v201_v31  ;;  %1338 = vmatmul.msk.f32.gmra.mxu1 %vm202_vm0, %v457_v32 }
 0x196   :  { %v1865_v33 = vpop.f32.mrf.mxu1 }
 0x199   :  { %1304 = vmatmul.msk.f32.gmra.mxu2 %vm202_vm0, %v240_v19  ;;  %1318 = vmatmul.msk.f32.gmra.mxu3 %vm202_vm0, %v1748_v63 }
 0x19b   :  { %v562_v35 = vld [vmem:[#allocation2 + $0xc0] sm:$0xff] }
 0x19c   :  { %1339 = vmatmul.msk.f32.gmra.mxu1 %vm202_vm0, %v562_v35 }
 0x19e   :  { %v600_v37 = vpop.f32.mrf.mxu1 }
 0x1a1   :  { %1305 = vmatmul.msk.f32.gmra.mxu2 %vm202_vm0, %v1741_v60  ;;  %1319 = vmatmul.msk.f32.gmra.mxu3 %vm202_vm0, %v1755_v3 }
 0x1a6   :  { %v603_v42 = vpop.f32.mrf.mxu1 }
 0x1a9   :  { %1306 = vmatmul.msk.f32.gmra.mxu2 %vm202_vm0, %v1748_v63  ;;  %1320 = vmatmul.msk.f32.gmra.mxu3 %vm202_vm0, %v454_v34 }
 0x1ac   :  { %v1871_v36 = vpop.f32.mrf.mxu2 }
 0x1ae   :  { %v606_v50 = vpop.f32.mrf.mxu1 }
 0x1b1   :  { %1307 = vmatmul.msk.f32.gmra.mxu2 %vm202_vm0, %v1755_v3  ;;  %1321 = vmatmul.msk.f32.gmra.mxu3 %vm202_vm0, %v455_v23 }
 0x1b4   :  { %v1882_v40 = vpop.f32.mrf.mxu2 }
 0x1b7   :  { %v609_v63 = vpop.f32.mrf.mxu1 }
 0x1b9   :  { %1322 = vmatmul.msk.f32.gmra.mxu3 %vm202_vm0, %v456_v28  ;;  %v812_v28 = vld [vmem:[%s2181_s4 + $0x88] sm:$0xff] }
 0x1bc   :  { %v1888_v43 = vpop.f32.mrf.mxu3  ;;  %v406_v44 = vpop.f32.mrf.mxu2 }
 0x1bd   :  { %v407_v59 = vadd.f32 %v406_v44, %v1763_v6 }
 0x1bf   :  { %v612_v8 = vpop.f32.mrf.mxu1 }
 0x1c1   :  { %1323 = vmatmul.msk.f32.gmra.mxu3 %vm202_vm0, %v457_v32  ;;  %v811_v32 = vld [vmem:[%s2181_s4 + $0x80] sm:$0xff] }
 0x1c4   :  { %v1903_v51 = vpop.f32.mrf.mxu3  ;;  %v409_v52 = vpop.f32.mrf.mxu2 }
 0x1c5   :  { %v410_v6 = vadd.f32 %v409_v52, %v1770_v9  ;;  %v840_v9 = vld [vmem:[%s2181_s4 + $0xa8] sm:$0xff]  ;;  %v898_v52 = vld [vmem:[%s2181_s4 + $0xf8] sm:$0xff] }
 0x1c7   :  { %v615_v30 = vpop.f32.mrf.mxu1 }
 0x1cc   :  { %v412_v60 = vpop.f32.mrf.mxu2  ;;  %v495_v61 = vpop.f32.mrf.mxu3 }
 0x1cd   :  { %v543_v0 = vadd.f32 %v495_v61, %v407_v59  ;;  %v413_v19 = vadd.f32 %v412_v60, %v1777_v11  ;;  %v895_v61 = vld [vmem:[%s2181_s4 + $0xe0] sm:$0xff] }
 0x1cf   :  { %v648_v3 = vadd.f32 %v600_v37, %v543_v0  ;;  %v870_v37 = vld [vmem:[%s2181_s4 + $0xd8] sm:$0xff]  ;;  %v618_v47 = vpop.f32.mrf.mxu1 }
 0x1d0   :  { %v926_v0 = vld [vmem:[%s2181_s4 + $0x118] sm:$0xff] }
 0x1d1   :  { %v668_v4 = vadd.f32 %v1924_v2, %v648_v3 }
 0x1d3   :  { %v684_v7 = vmax.f32 %v668_v4, 0.0 }
 0x1d4   :  { %v415_v10 = vpop.f32.mrf.mxu2  ;;  %v498_v56 = vpop.f32.mrf.mxu3 }
 0x1d5   :  { %v544_v1 = vadd.f32 %v498_v56, %v410_v6  ;;  %1341 = vmatmul.msk.f32.vlgmr.msra.gmra.mxu3 %vm708_vm1, %v684_v7  ;;  %v416_v34 = vadd.f32 %v415_v10, %v1785_v49  ;;  %v868_v49 = vld [vmem:[%s2181_s4 + $0xc8] sm:$0xff]  ;;  %v925_v7 = vld [vmem:[%s2181_s4 + $0x110] sm:$0xff] }
 0x1d6   :  { %858 = vmatpush.msra.mxu3 %v842_v5  ;;  %v923_v5 = vld [vmem:[%s2181_s4 + $0x100] sm:$0xff] }
 0x1d7   :  { %v649_v15 = vadd.f32 %v603_v42, %v544_v1  ;;  %v869_v42 = vld [vmem:[%s2181_s4 + $0xd0] sm:$0xff]  ;;  %v621_v10 = vpop.f32.mrf.mxu1 }
 0x1d8   :  { %859 = vmatpush.msra.mxu3 %v841_v16  ;;  %v954_v16 = vld [vmem:[%s2181_s4 + $0x138] sm:$0xff] }
 0x1d9   :  { %v669_v18 = vadd.f32 %v1924_v2, %v649_v15 }
 0x1da   :  { %860 = vmatpush.msra.mxu3 %v840_v9 }
 0x1db   :  { %v685_v20 = vmax.f32 %v669_v18, 0.0 }
 0x1dc   :  { %v418_v23 = vpop.f32.mrf.mxu2  ;;  %v501_v24 = vpop.f32.mrf.mxu3  ;;  %861 = vmatpush.msra.mxu3 %v839_v25  ;;  %v951_v25 = vld [vmem:[%s2181_s4 + $0x120] sm:$0xff] }
 0x1dd   :  { %v545_v26 = vadd.f32 %v501_v24, %v413_v19  ;;  %1340 = vmatmul.msk.f32.vlgmr.msra.gmra.mxu2 %vm708_vm1, %v685_v20  ;;  %v419_v48 = vadd.f32 %v418_v23, %v1792_v53  ;;  %v896_v53 = vld [vmem:[%s2181_s4 + $0xe8] sm:$0xff]  ;;  %v953_v20 = vld [vmem:[%s2181_s4 + $0x130] sm:$0xff] }
 0x1de   :  { %830 = vmatpush.msra.mxu2 %v814_v21 }
 0x1df   :  { %v650_v11 = vadd.f32 %v606_v50, %v545_v26  ;;  %v624_v23 = vpop.f32.mrf.mxu1 }
 0x1e0   :  { %831 = vmatpush.msra.mxu2 %v813_v27 }
 0x1e1   :  { %v670_v31 = vadd.f32 %v1924_v2, %v650_v11  ;;  %v982_v11 = vld [vmem:[%s2181_s4 + $0x158] sm:$0xff] }
 0x1e2   :  { %832 = vmatpush.msra.mxu2 %v812_v28 }
 0x1e3   :  { %v686_v35 = vmax.f32 %v670_v31, 0.0 }
 0x1e4   :  { %v421_v38 = vpop.f32.mrf.mxu2  ;;  %v504_v39 = vpop.f32.mrf.mxu3  ;;  %833 = vmatpush.msra.mxu2 %v811_v32  ;;  %v981_v32 = vld [vmem:[%s2181_s4 + $0x150] sm:$0xff] }
 0x1e5   :  { %v546_v41 = vadd.f32 %v504_v39, %v416_v34  ;;  %1342 = vmatmul.msk.f32.vlgmr.msrb.gmra.mxu2 %vm708_vm1, %v686_v35  ;;  %v422_v62 = vadd.f32 %v421_v38, %v1805_v12  ;;  %v924_v12 = vld [vmem:[%s2181_s4 + $0x108] sm:$0xff] }
 0x1e6   :  { %886 = vmatpush.msrb.mxu2 %v870_v37  ;;  %v979_v37 = vld [vmem:[%s2181_s4 + $0x140] sm:$0xff] }
 0x1e7   :  { %v651_v44 = vadd.f32 %v609_v63, %v546_v41  ;;  %v627_v38 = vpop.f32.mrf.mxu1 }
 0x1e8   :  { %887 = vmatpush.msrb.mxu2 %v869_v42  ;;  %v1010_v42 = vld [vmem:[%s2181_s4 + $0x178] sm:$0xff] }
 0x1e9   :  { %v671_v45 = vadd.f32 %v1924_v2, %v651_v44 }
 0x1ea   :  { %888 = vmatpush.msrb.mxu2 %v868_v49 }
 0x1eb   :  { %v687_v50 = vmax.f32 %v671_v45, 0.0  ;;  %v1009_v45 = vld [vmem:[%s2181_s4 + $0x170] sm:$0xff] }
 0x1ec   :  { %v424_v54 = vpop.f32.mrf.mxu2  ;;  %v507_v55 = vpop.f32.mrf.mxu3  ;;  %889 = vmatpush.msrb.mxu2 %v867_v46 }
 0x1ed   :  { %v547_v57 = vadd.f32 %v507_v55, %v419_v48  ;;  %1343 = vmatmul.msk.f32.vlgmr.msrb.gmra.mxu3 %vm708_vm1, %v687_v50  ;;  %v1007_v50 = vld [vmem:[%s2181_s4 + $0x160] sm:$0xff]  ;;  %v1038_v55 = vld [vmem:[%s2181_s4 + $0x198] sm:$0xff] }
 0x1ee   :  { %914 = vmatpush.msrb.mxu3 %v898_v52 }
 0x1ef   :  { %v652_v59 = vadd.f32 %v612_v8, %v547_v57  ;;  %v425_v8 = vadd.f32 %v424_v54, %v1819_v13  ;;  %v952_v13 = vld [vmem:[%s2181_s4 + $0x128] sm:$0xff]  ;;  %v630_v57 = vpop.f32.mrf.mxu1 }
 0x1f0   :  { %915 = vmatpush.msrb.mxu3 %v897_v58 }
 0x1f1   :  { %v672_v60 = vadd.f32 %v1924_v2, %v652_v59 }
 0x1f2   :  { %916 = vmatpush.msrb.mxu3 %v896_v53  ;;  %v1037_v53 = vld [vmem:[%s2181_s4 + $0x190] sm:$0xff] }
 0x1f3   :  { %v688_v63 = vmax.f32 %v672_v60, 0.0 }
 0x1f4   :  { %v427_v3 = vpop.f32.mrf.mxu2  ;;  %v510_v4 = vpop.f32.mrf.mxu3  ;;  %917 = vmatpush.msrb.mxu3 %v895_v61 }
 0x1f5   :  { %v548_v6 = vadd.f32 %v510_v4, %v422_v62  ;;  %1344 = vmatmul.msk.f32.vlgmr.msra.gmra.mxu2 %vm708_vm1, %v688_v63  ;;  %v428_v26 = vadd.f32 %v427_v3, %v1825_v14  ;;  %v980_v14 = vld [vmem:[%s2181_s4 + $0x148] sm:$0xff]  ;;  %v1035_v63 = vld [vmem:[%s2181_s4 + $0x180] sm:$0xff]  ;;  %v1066_v4 = vld [vmem:[%s2181_s4 + $0x1b8] sm:$0xff] }
 0x1f6   :  { %942 = vmatpush.msra.mxu2 %v926_v0 }
 0x1f7   :  { %v653_v56 = vadd.f32 %v615_v30, %v548_v6 }
 0x1f8   :  { %943 = vmatpush.msra.mxu2 %v925_v7 }
 0x1f9   :  { %v673_v1 = vadd.f32 %v1924_v2, %v653_v56  ;;  %v633_v56 = vpop.f32.mrf.mxu1 }
 0x1fa   :  { %944 = vmatpush.msra.mxu2 %v924_v12 }
 0x1fb   :  { %v689_v15 = vmax.f32 %v673_v1, 0.0 }
 0x1fc   :  { %v430_v18 = vpop.f32.mrf.mxu2  ;;  %v513_v9 = vpop.f32.mrf.mxu3  ;;  %945 = vmatpush.msra.mxu2 %v923_v5  ;;  %v1063_v5 = vld [vmem:[%s2181_s4 + $0x1a0] sm:$0xff] }
 0x1fd   :  { %v549_v19 = vadd.f32 %v513_v9, %v425_v8  ;;  %1345 = vmatmul.msk.f32.vlgmr.msra.gmra.mxu3 %vm708_vm1, %v689_v15  ;;  %v431_v39 = vadd.f32 %v430_v18, %v1832_v17  ;;  %v1008_v17 = vld [vmem:[%s2181_s4 + $0x168] sm:$0xff]  ;;  %v1094_v18 = vld [vmem:[%s2181_s4 + $0x1d8] sm:$0xff] }
 0x1fe   :  { %970 = vmatpush.msra.mxu3 %v954_v16 }
 0x1ff   :  { %v654_v21 = vadd.f32 %v618_v47, %v549_v19 }
 0x200   :  { %971 = vmatpush.msra.mxu3 %v953_v20  ;;  %v1093_v20 = vld [vmem:[%s2181_s4 + $0x1d0] sm:$0xff] }
 0x201   :  { %v674_v24 = vadd.f32 %v1924_v2, %v654_v21  ;;  %v636_v21 = vpop.f32.mrf.mxu1 }
 0x202   :  { %972 = vmatpush.msra.mxu3 %v952_v13 }
 0x203   :  { %v690_v27 = vmax.f32 %v674_v24, 0.0  ;;  %v1091_v24 = vld [vmem:[%s2181_s4 + $0x1c0] sm:$0xff] }
 0x204   :  { %v433_v28 = vpop.f32.mrf.mxu2  ;;  %v516_v30 = vpop.f32.mrf.mxu3  ;;  %973 = vmatpush.msra.mxu3 %v951_v25 }
 0x205   :  { %v550_v31 = vadd.f32 %v516_v30, %v428_v26  ;;  %1346 = vmatmul.msk.f32.vlgmr.msrb.gmra.mxu2 %vm708_vm1, %v690_v27  ;;  %v434_v52 = vadd.f32 %v433_v28, %v1838_v22  ;;  %v1036_v22 = vld [vmem:[%s2181_s4 + $0x188] sm:$0xff]  ;;  %v1122_v27 = vld [vmem:[%s2181_s4 + $0x1f8] sm:$0xff] }
 0x206   :  { %998 = vmatpush.msrb.mxu2 %v982_v11 }
 0x207   :  { %v655_v34 = vadd.f32 %v621_v10, %v550_v31  ;;  %v1065_v10 = vld [vmem:[%s2181_s4 + $0x1b0] sm:$0xff] }
 0x208   :  { %999 = vmatpush.msrb.mxu2 %v981_v32  ;;  %v1121_v31 = vld [vmem:[%s2181_s4 + $0x1f0] sm:$0xff] }
 0x209   :  { %v675_v35 = vadd.f32 %v1924_v2, %v655_v34  ;;  %v639_v34 = vpop.f32.mrf.mxu1 }
 0x20a   :  { %1000 = vmatpush.msrb.mxu2 %v980_v14 }
 0x20b   :  { %v691_v41 = vmax.f32 %v675_v35, 0.0  ;;  %v1119_v35 = vld [vmem:[%s2181_s4 + $0x1e0] sm:$0xff] }
 0x20c   :  { %v519_v44 = vpop.f32.mrf.mxu3  ;;  %1001 = vmatpush.msrb.mxu2 %v979_v37  ;;  %v436_v46 = vpop.f32.mrf.mxu2 }
 0x20d   :  { %v551_v49 = vadd.f32 %v519_v44, %v431_v39  ;;  %1347 = vmatmul.msk.f32.vlgmr.msrb.gmra.mxu3 %vm708_vm1, %v691_v41  ;;  %v437_v0 = vadd.f32 %v436_v46, %v1857_v29  ;;  %v1064_v29 = vld [vmem:[%s2181_s4 + $0x1a8] sm:$0xff] }
 0x20e   :  { %1026 = vmatpush.msrb.mxu3 %v1010_v42 }
 0x20f   :  { %v656_v47 = vadd.f32 %v624_v23, %v551_v49 }
 0x210   :  { %1027 = vmatpush.msrb.mxu3 %v1009_v45 }
 0x211   :  { %v676_v48 = vadd.f32 %v1924_v2, %v656_v47  ;;  %v642_v45 = vpop.f32.mrf.mxu1 }
 0x212   :  { %1028 = vmatpush.msrb.mxu3 %v1008_v17 }
 0x213   :  { %v692_v54 = vmax.f32 %v676_v48, 0.0 }
 0x214   :  { %v522_v58 = vpop.f32.mrf.mxu3  ;;  %1029 = vmatpush.msrb.mxu3 %v1007_v50  ;;  %v439_v61 = vpop.f32.mrf.mxu2 }
 0x215   :  { %v552_v59 = vadd.f32 %v522_v58, %v434_v52  ;;  %1348 = vmatmul.msk.f32.vlgmr.msra.gmra.mxu2 %vm708_vm1, %v692_v54  ;;  %v440_v15 = vadd.f32 %v439_v61, %v1865_v33  ;;  %v1092_v33 = vld [vmem:[%s2181_s4 + $0x1c8] sm:$0xff] }
 0x216   :  { %1054 = vmatpush.msra.mxu2 %v1038_v55 }
 0x217   :  { %v657_v60 = vadd.f32 %v627_v38, %v552_v59 }
 0x218   :  { %1055 = vmatpush.msra.mxu2 %v1037_v53 }
 0x219   :  { %v677_v62 = vadd.f32 %v1924_v2, %v657_v60  ;;  %v645_v58 = vpop.f32.mrf.mxu1 }
 0x21a   :  { %1056 = vmatpush.msra.mxu2 %v1036_v22 }
 0x21b   :  { %v693_v3 = vmax.f32 %v677_v62, 0.0 }
 0x21c   :  { %v525_v6 = vpop.f32.mrf.mxu3  ;;  %1057 = vmatpush.msra.mxu2 %v1035_v63  ;;  %v442_v8 = vpop.f32.mrf.mxu2 }
 0x21d   :  { %v553_v7 = vadd.f32 %v525_v6, %v437_v0  ;;  %1349 = vmatmul.msk.f32.vlgmr.msra.gmra.mxu3 %vm708_vm1, %v693_v3  ;;  %v443_v25 = vadd.f32 %v442_v8, %v1871_v36  ;;  %v1120_v36 = vld [vmem:[%s2181_s4 + $0x1e8] sm:$0xff]  ;;  %v1166_v8 = vld [vmem:[%s2183_s7] sm:$0xff] }
 0x21e   :  { %1082 = vmatpush.msra.mxu3 %v1066_v4 }
 0x21f   :  { %v658_v12 = vadd.f32 %v630_v57, %v553_v7 }
 0x220   :  { %1083 = vmatpush.msra.mxu3 %v1065_v10 }
 0x221   :  { %v678_v1 = vadd.f32 %v1924_v2, %v658_v12 }
 0x222   :  { %1084 = vmatpush.msra.mxu3 %v1064_v29 }
 0x223   :  { %v694_v16 = vmax.f32 %v678_v1, 0.0 }
 0x224   :  { %v528_v9 = vpop.f32.mrf.mxu3  ;;  %1085 = vmatpush.msra.mxu3 %v1063_v5  ;;  %v445_v11 = vpop.f32.mrf.mxu2 }
 0x225   :  { %v554_v19 = vadd.f32 %v528_v9, %v440_v15  ;;  %1350 = vmatmul.msk.f32.vlgmr.msrb.gmra.mxu2 %vm708_vm1, %v694_v16  ;;  %v446_v37 = vadd.f32 %v445_v11, %v1882_v40 }
 0x226   :  { %1110 = vmatpush.msrb.mxu2 %v1094_v18 }
 0x227   :  { %v659_v13 = vadd.f32 %v633_v56, %v554_v19 }
 0x228   :  { %1111 = vmatpush.msrb.mxu2 %v1093_v20 }
 0x229   :  { %v679_v23 = vadd.f32 %v1924_v2, %v659_v13 }
 0x22a   :  { %1112 = vmatpush.msrb.mxu2 %v1092_v33 }
 0x22b   :  { %v695_v26 = vmax.f32 %v679_v23, 0.0 }
 0x22c   :  { %v531_v28 = vpop.f32.mrf.mxu3  ;;  %1113 = vmatpush.msrb.mxu2 %v1091_v24  ;;  %v448_v42 = vpop.f32.mrf.mxu2 }
 0x22d   :  { %v555_v30 = vadd.f32 %v531_v28, %v443_v25  ;;  %1351 = vmatmul.msk.f32.vlgmr.msrb.gmra.mxu3 %vm708_vm1, %v695_v26  ;;  %v449_v46 = vadd.f32 %v448_v42, %v1888_v43  ;;  %v1209_v42 = vld [vmem:[%s2186_s9 + $0x20] sm:$0xff] }
 0x22e   :  { %1138 = vmatpush.msrb.mxu3 %v1122_v27  ;;  %v1379_v27 = vld [vmem:[%s2182_s5] ss:$0 sm:$0xff]  ;;  %s1387_s5 = smov 96  }
 0x22f   :  { %v660_v32 = vadd.f32 %v636_v21, %v555_v30 }
 0x230   :  { %1139 = vmatpush.msrb.mxu3 %v1121_v31  ;;  %v1155_v31 = vld [vmem:[%s2184_s6] sm:$0xff] }
 0x231   :  { %v680_v14 = vadd.f32 %v1924_v2, %v660_v32 }
 0x232   :  { %1140 = vmatpush.msrb.mxu3 %v1120_v36 }
 0x233   :  { %v696_v38 = vmax.f32 %v680_v14, 0.0 }
 0x234   :  { %v534_v39 = vpop.f32.mrf.mxu3  ;;  %1141 = vmatpush.msrb.mxu3 %v1119_v35  ;;  %v451_v40 = vpop.f32.mrf.mxu2 }
 0x235   :  { %v556_v41 = vadd.f32 %v534_v39, %v446_v37  ;;  %1352 = vmatmul.msk.f32.vlgmr.msra.gmra.mxu2 %vm708_vm1, %v696_v38  ;;  %v452_v54 = vadd.f32 %v451_v40, %v1903_v51  ;;  %v1212_v38 = vld [vmem:[%s2186_s9 + $0x38] sm:$0xff]  ;;  %v1211_v39 = vld [vmem:[%s2186_s9 + $0x30] sm:$0xff]  ;;  %v1380_v40 = vld [vmem:[%s2185_s8] ss:$0 sm:$0xff] }
 0x237   :  { %v661_v44 = vadd.f32 %v639_v34, %v556_v41  ;;  %v1210_v41 = vld [vmem:[%s2186_s9 + $0x28] sm:$0xff] }
 0x239   :  { %v681_v49 = vadd.f32 %v1924_v2, %v661_v44  ;;  %v1208_v44 = vld [vmem:[%s2186_s9 + $0x18] sm:$0xff] }
 0x23b   :  { %v697_v47 = vmax.f32 %v681_v49, 0.0  ;;  %v1207_v49 = vld [vmem:[%s2186_s9 + $0x10] sm:$0xff] }
 0x23c   :  { %v537_v17 = vpop.f32.mrf.mxu3 }
 0x23d   :  { %v557_v48 = vadd.f32 %v537_v17, %v449_v46  ;;  %1353 = vmatmul.msk.f32.vlgmr.msra.gmra.mxu3 %vm708_vm1, %v697_v47 }
 0x23e   :  { %1228 = vmatpush.msra.mxu3 %v1212_v38 }
 0x23f   :  { %v662_v50 = vadd.f32 %v642_v45, %v557_v48  ;;  %v1206_v45 = vld [vmem:[%s2186_s9 + $0x8] sm:$0xff]  ;;  %v1205_v48 = vld [vmem:[%s2186_s9] sm:$0xff] }
 0x240   :  { %1229 = vmatpush.msra.mxu3 %v1211_v39 }
 0x241   :  { %v682_v52 = vadd.f32 %v1924_v2, %v662_v50  ;;  %v1242_v50 = vld [vmem:[%s2188_s11 + $0x8] sm:$0xff] }
 0x242   :  { %1230 = vmatpush.msra.mxu3 %v1210_v41 }
 0x243   :  { %v698_v55 = vmax.f32 %v682_v52, 0.0 }
 0x244   :  { %v540_v57 = vpop.f32.mrf.mxu3  ;;  %1231 = vmatpush.msra.mxu3 %v1209_v42 }
 0x245   :  { %v558_v59 = vadd.f32 %v540_v57, %v452_v54  ;;  %1354 = vmatmul.msk.f32.vlgmr.msrb.gmra.mxu2 %vm708_vm1, %v698_v55 }
 0x246   :  { %1232 = vmatpush.msra.mxu3 %v1208_v44 }
 0x247   :  { %v663_v53 = vadd.f32 %v645_v58, %v558_v59  ;;  %v1241_v59 = vld [vmem:[%s2188_s11] sm:$0xff] }
 0x248   :  { %1233 = vmatpush.msra.mxu3 %v1207_v49 }
 0x249   :  { %v683_v43 = vadd.f32 %v1924_v2, %v663_v53  ;;  %v1167_v2 = vld [vmem:[%s2183_s7 + $0x8] sm:$0xff]  ;;  %s1385_s7 = smov 64   ;;  %v1381_v53 = vld [vmem:[%s2187_s10] ss:$0 sm:$0xff] }
 0x24a   :  { %1192 = vmatpush.msra.mxu2 %v1167_v2  ;;  %1234 = vmatpush.msra.mxu3 %v1206_v45 }
 0x24b   :  { %v699_v60 = vmax.f32 %v683_v43, 0.0 }
 0x24c   :  { %1193 = vmatpush.msra.mxu2 %v1166_v8  ;;  %1235 = vmatpush.msra.mxu3 %v1205_v48 }
 0x24d   :  { %1355 = vmatmul.msk.f32.vlgmr.msrb.gmra.mxu3 %vm708_vm1, %v699_v60 }
 0x24e   :  { %1264 = vmatpush.msrb.mxu2 %v1242_v50 }
 0x250   :  { %1265 = vmatpush.msrb.mxu2 %v1241_v59 }
 0x258   :  { %v752_v61 = vpop.f32.mrf.mxu3 }
 0x260   :  { %v729_v22 = vpop.f32.mrf.mxu2 }
 0x261   :  { %v753_v7 = vadd.f32 %v752_v61, %v729_v22  ;;  %v1382_v61 = vld [vmem:[%s2189_s12] ss:$0 sm:$0xff] }
 0x268   :  { %v779_v62 = vpop.f32.mrf.mxu2 }
 0x269   :  { %v782_v10 = vadd.f32 %v779_v62, %v753_v7 }
 0x270   :  { %v807_v63 = vpop.f32.mrf.mxu3 }
 0x271   :  { %v810_v12 = vadd.f32 %v807_v63, %v782_v10 }
 0x278   :  { %v835_v0 = vpop.f32.mrf.mxu2 }
 0x279   :  { %v838_v29 = vadd.f32 %v835_v0, %v810_v12 }
 0x280   :  { %v863_v3 = vpop.f32.mrf.mxu3 }
 0x281   :  { %v866_v5 = vadd.f32 %v863_v3, %v838_v29 }
 0x288   :  { %v891_v4 = vpop.f32.mrf.mxu2 }
 0x289   :  { %v894_v15 = vadd.f32 %v891_v4, %v866_v5 }
 0x290   :  { %v919_v51 = vpop.f32.mrf.mxu3 }
 0x291   :  { %v922_v18 = vadd.f32 %v919_v51, %v894_v15 }
 0x298   :  { %v947_v6 = vpop.f32.mrf.mxu2 }
 0x299   :  { %v950_v9 = vadd.f32 %v947_v6, %v922_v18 }
 0x2a0   :  { %v975_v56 = vpop.f32.mrf.mxu3 }
 0x2a1   :  { %v978_v20 = vadd.f32 %v975_v56, %v950_v9 }
 0x2a8   :  { %v1003_v1 = vpop.f32.mrf.mxu2 }
 0x2a9   :  { %v1006_v21 = vadd.f32 %v1003_v1, %v978_v20 }
 0x2b0   :  { %v1031_v16 = vpop.f32.mrf.mxu3 }
 0x2b1   :  { %v1034_v33 = vadd.f32 %v1031_v16, %v1006_v21 }
 0x2b8   :  { %v1059_v19 = vpop.f32.mrf.mxu2 }
 0x2b9   :  { %v1062_v23 = vadd.f32 %v1059_v19, %v1034_v33 }
 0x2c0   :  { %v1087_v13 = vpop.f32.mrf.mxu3 }
 0x2c1   :  { %v1090_v25 = vadd.f32 %v1087_v13, %v1062_v23 }
 0x2c8   :  { %v1115_v24 = vpop.f32.mrf.mxu2 }
 0x2c9   :  { %v1118_v26 = vadd.f32 %v1115_v24, %v1090_v25 }
 0x2d0   :  { %v1143_v11 = vpop.f32.mrf.mxu3 }
 0x2d1   :  { %v1146_v28 = vadd.f32 %v1143_v11, %v1118_v26 }
 0x2d3   :  { %v1151_v30 = vadd.f32 %v1379_v27, %v1146_v28 }
 0x2d5   :  { %1173 = vrot.lane.b32.xlu0 %v1151_v30, %s1385_s7  ;;  %v1152_v32 = vmul.f32 0.5, %v1151_v30 }
 0x2d7   :  { %v1153_v36 = vmul.f32 1.442695, %v1152_v32 }
 0x2d9   :  { %1383 = vpow2.f32 %v1153_v36 }
 0x2dd   :  { %1157 = vrot.lane.b32.xlu0 %v1155_v31, %s1386_s21 }
 0x2df   :  { %v1384_v14 = vpop.eup %1383 }
 0x347   :  { %v1174_v34 = vpop.permute.xlu0 %1173 }
 0x348   :  { %1356 = vmatmul.msk.f32.vlgmr.msra.gmra.mxu2 %vm1175_vm2, %v1174_v34 }
 0x34f   :  { %v1158_v35 = vpop.permute.xlu0 %1157 }
 0x350   :  { %v1160_v37 = vmul.f32 %v1384_v14, %v1158_v35 }
 0x352   :  { %1162 = vrot.lane.b32.xlu1 %v1160_v37, %s1387_s5 }
 0x3c4   :  { %v1163_v46 = vpop.permute.xlu1 %1162 }
 0x3c5   :  { %v1165_v47 = vadd.f32 %v1163_v46, %v1151_v30 }
 0x3c7   :  { %v1199_v17 = vmax.f32 %v1165_v47, 0.0 }
 0x3c9   :  { %1201 = vrot.lane.b32.xlu1 %v1199_v17, %s1386_s21 }
 0x3cb   :  { %v1195_v52 = vpop.f32.mrf.mxu2 }
 0x3cc   :  { %v1196_v54 = vadd.f32 %v1380_v40, %v1195_v52 }
 0x3ce   :  { %v1198_v55 = vmax.f32 %v1196_v54, 0.0 }
 0x43b   :  { %v1202_v57 = vpop.permute.xlu1 %1201 }
 0x43c   :  { %v1204_v58 = vsel %vm708_vm1, %v1198_v55, %v1202_v57 }
 0x43d   :  { %1357 = vmatmul.msk.f32.vlgmr.msra.gmra.mxu3 %vm202_vm0, %v1204_v58 }
 0x4c0   :  { %v1237_v43 = vpop.f32.mrf.mxu3 }
 0x4c1   :  { %v1238_v60 = vadd.f32 %v1381_v53, %v1237_v43 }
 0x4c3   :  { %v1240_v22 = vmax.f32 %v1238_v60, 0.0 }
 0x4c5   :  { %1358 = vmatmul.msk.f32.vlgmr.msrb.gmra.mxu2 %vm1175_vm2, %v1240_v22 }
 0x548   :  { %v1267_v62 = vpop.f32.mrf.mxu2 }
 0x549   :  { %v1268_v63 = vadd.f32 %v1382_v61, %v1267_v62 }
 0x54b   :  { %1271 = vst.msk [vmem:[%s2190_s13] sm:$0xff] %vm1270_vm3, %v1268_v63 }

</bundles_post_ra>
